<compile_context>
chip_gen: v5e
topology: v5e:2x2
jax: 0.10.0
libtpu: 0.0.40
codegen_flags: <defaults>
</compile_context>

<pallas_src>
import functools

import jax
import jax.numpy as jnp
from jax.experimental import pallas as pl
from jax.experimental.pallas import tpu as pltpu


def _round_up(x, m):
    return (x + m - 1) // m * m


def fold_bn(gamma, beta, mean, var, eps=1e-5):
    scale = gamma / jnp.sqrt(var + eps)
    bias = beta - mean * scale
    return scale, bias


# ----------------------------------------------------------------------------
# Fused BasicBlock kernel: conv1+bn1+relu -> conv2+bn2 -> +shortcut -> relu
# ----------------------------------------------------------------------------
def _basic_block_kernel(x1_ref, xsc_ref, w1_ref, b1_ref, w2_ref, b2_ref,
                        wsc_ref, bsc_ref, o_ref, pad_ref, *, stride):
    _, Ho, Wo, Cp = o_ref.shape
    Cin = w1_ref.shape[1]
    Csc = wsc_ref.shape[0]
    M = Ho * Wo
    s = stride

    # conv2 halo: zero the padded scratch (megacore-safe to do every step);
    # the interior is fully overwritten below.
    pad_ref[...] = jnp.zeros_like(pad_ref)

    # ---- conv1 (3x3, stride s) + bn1 (scale folded into w1) + ReLU ---------
    # x1_ref holds the spatially padded input split into s*s phases so every
    # tap is a unit-stride static slice (in-kernel im2col, no 9x HBM blowup).
    acc1 = jnp.zeros((M, Cp), jnp.float32)
    for ki in range(3):
        pi, ri = ki % s, ki // s
        for kj in range(3):
            pj, rj = kj % s, kj // s
            xt = x1_ref[0, pi * s + pj, ri:ri + Ho, rj:rj + Wo, :]  # (Ho,Wo,Cin) bf16
            acc1 = acc1 + jnp.dot(xt.reshape(M, Cin), w1_ref[ki * 3 + kj],
                                  preferred_element_type=jnp.float32)
    out1 = jnp.maximum(acc1 + b1_ref[...], 0.0)                      # (M, Cp) f32

    # Stage conv1's output (bf16, zero halo) in VMEM and feed conv2 from it:
    # the intermediate activation never touches HBM.
    pad_ref[1:Ho + 1, 1:Wo + 1, :] = out1.reshape(Ho, Wo, Cp).astype(pad_ref.dtype)

    # ---- conv2 (3x3, stride 1) + bn2 ---------------------------------------
    acc2 = jnp.zeros((M, Cp), jnp.float32)
    for ki in range(3):
        for kj in range(3):
            xt = pad_ref[ki:ki + Ho, kj:kj + Wo, :]                  # (Ho,Wo,Cp) bf16
            acc2 = acc2 + jnp.dot(xt.reshape(M, Cp), w2_ref[ki * 3 + kj],
                                  preferred_element_type=jnp.float32)

    # ---- shortcut (1x1 conv + bn, or identity folded as an eye matrix) -----
    sc = jnp.dot(xsc_ref[0].reshape(M, Csc), wsc_ref[...],
                 preferred_element_type=jnp.float32) + bsc_ref[...]

    out2 = jnp.maximum(acc2 + b2_ref[...] + sc, 0.0)
    o_ref[...] = out2.reshape(1, Ho, Wo, Cp).astype(o_ref.dtype)


# ----------------------------------------------------------------------------
# Wrapper: BN folding, bf16 cast, channel padding, phase split, pallas_call
# ----------------------------------------------------------------------------
def basic_block_forward(x_nchw, params, *, stride):
    """Matches BasicBlock.forward with inference-mode BatchNorm."""
    N, in_planes, H, W = x_nchw.shape
    planes = params["w1"].shape[0]
    KH = KW = 3
    s = stride
    assert H % s == 0 and W % s == 0, "spatial dims must be divisible by stride"
    Ho, Wo = (H + 2 - KH) // s + 1, (W + 2 - KW) // s + 1
    Cp = _round_up(planes, 128)            # lane-dense stores / MXU-friendly K for conv2

    x = jnp.transpose(x_nchw, (0, 2, 3, 1)).astype(jnp.float32)      # NHWC

    # Fold BN scale into weights, pad Cout -> Cp (zeros), cast to bf16.
    s1, b1 = fold_bn(*params["bn1"])
    w1 = jnp.transpose(params["w1"] * s1[:, None, None, None], (2, 3, 1, 0))   # HWIO
    w1 = jnp.pad(w1, ((0, 0), (0, 0), (0, 0), (0, Cp - planes)))
    w1 = w1.reshape(KH * KW, in_planes, Cp).astype(jnp.bfloat16)
    b1 = jnp.pad(b1, (0, Cp - planes)).reshape(1, Cp).astype(jnp.float32)

    s2, b2 = fold_bn(*params["bn2"])
    w2 = jnp.transpose(params["w2"] * s2[:, None, None, None], (2, 3, 1, 0))
    w2 = jnp.pad(w2, ((0, 0), (0, 0), (0, Cp - planes), (0, Cp - planes)))
    w2 = w2.reshape(KH * KW, Cp, Cp).astype(jnp.bfloat16)
    b2 = jnp.pad(b2, (0, Cp - planes)).reshape(1, Cp).astype(jnp.float32)

    if stride != 1 or in_planes != planes:          # 1x1 conv + BN shortcut
        ssc, bsc = fold_bn(*params["bn_sc"])
        wsc = (params["w_sc"][:, :, 0, 0] * ssc[:, None]).T           # (Cin, planes)
        wsc = jnp.pad(wsc, ((0, 0), (0, Cp - planes))).astype(jnp.bfloat16)
        bsc = jnp.pad(bsc, (0, Cp - planes)).reshape(1, Cp).astype(jnp.float32)
        x_sc = x[:, ::s, ::s, :].astype(jnp.bfloat16)                 # (N, Ho, Wo, Cin)
    else:                                           # identity shortcut as padded eye
        wsc = jnp.pad(jnp.eye(planes, dtype=jnp.float32),
                      ((0, 0), (0, Cp - planes))).astype(jnp.bfloat16)
        bsc = jnp.zeros((1, Cp), jnp.float32)
        x_sc = x.astype(jnp.bfloat16)                                 # (N, Ho, Wo, planes)
    Csc = x_sc.shape[-1]

    # conv1 input: spatial pad + phase (space-to-depth) split so the kernel
    # only ever needs unit-stride static slices per tap.
    xp = jnp.pad(x, ((0, 0), (1, 1), (1, 1), (0, 0)))
    Hph, Wph = Ho + (KH - 1) // s, Wo + (KW - 1) // s
    phases = [xp[:, p::s, q::s, :][:, :Hph, :Wph, :]
              for p in range(s) for q in range(s)]
    x1 = jnp.stack(phases, axis=1).astype(jnp.bfloat16)               # (N, s*s, Hph, Wph, Cin)

    flops = 2 * N * Ho * Wo * Cp * (KH * KW * in_planes + KH * KW * Cp + Csc)
    bytes_accessed = ((x1.size + x_sc.size + w1.size + w2.size + wsc.size) * 2
                      + (b1.size + b2.size + bsc.size) * 4
                      + N * Ho * Wo * Cp * 4)

    out = pl.pallas_call(
        functools.partial(_basic_block_kernel, stride=s),
        out_shape=jax.ShapeDtypeStruct((N, Ho, Wo, Cp), jnp.float32),
        grid=(N,),
        in_specs=[
            pl.BlockSpec((1, s * s, Hph, Wph, in_planes), lambda n: (n, 0, 0, 0, 0)),
            pl.BlockSpec((1, Ho, Wo, Csc), lambda n: (n, 0, 0, 0)),
            pl.BlockSpec((KH * KW, in_planes, Cp), lambda n: (0, 0, 0)),
            pl.BlockSpec((1, Cp), lambda n: (0, 0)),
            pl.BlockSpec((KH * KW, Cp, Cp), lambda n: (0, 0, 0)),
            pl.BlockSpec((1, Cp), lambda n: (0, 0)),
            pl.BlockSpec((Csc, Cp), lambda n: (0, 0)),
            pl.BlockSpec((1, Cp), lambda n: (0, 0)),
        ],
        out_specs=pl.BlockSpec((1, Ho, Wo, Cp), lambda n: (n, 0, 0, 0)),
        scratch_shapes=[pltpu.VMEM((Ho + 2, Wo + 2, Cp), jnp.bfloat16)],
        compiler_params=pltpu.CompilerParams(dimension_semantics=("parallel",)),
        cost_estimate=pl.CostEstimate(flops=flops, transcendentals=0,
                                      bytes_accessed=bytes_accessed),
    )(x1, x_sc, w1, b1, w2, b2, wsc, bsc)

    return jnp.transpose(out[..., :planes], (0, 3, 1, 2))             # back to NCHW


# ----------------------------------------------------------------------------
# Pure-JAX reference mirroring the kernel's bf16-in / f32-accum numerics
# ----------------------------------------------------------------------------
def _conv_bn_ref(x_nhwc, w_oihw, bn, *, stride, padding, relu):
    scale, bias = fold_bn(*bn)
    w_hwio = jnp.transpose(w_oihw * scale[:, None, None, None], (2, 3, 1, 0))
    y = jax.lax.conv_general_dilated(
        x_nhwc.astype(jnp.bfloat16), w_hwio.astype(jnp.bfloat16),
        window_strides=(stride, stride),
        padding=((padding, padding), (padding, padding)),
        dimension_numbers=("NHWC", "HWIO", "NHWC"),
        preferred_element_type=jnp.float32)
    y = y + bias.reshape(1, 1, 1, -1)
    return jnp.maximum(y, 0.0) if relu else y


def basic_block_ref(x_nchw, params, *, stride):
    in_planes = x_nchw.shape[1]
    planes = params["w1"].shape[0]
    x = jnp.transpose(x_nchw, (0, 2, 3, 1)).astype(jnp.float32)

    out1 = _conv_bn_ref(x, params["w1"], params["bn1"], stride=stride, padding=1, relu=True)
    out1 = out1.astype(jnp.bfloat16).astype(jnp.float32)   # mirror bf16 hand-off to conv2
    out2 = _conv_bn_ref(out1, params["w2"], params["bn2"], stride=1, padding=1, relu=False)

    if stride != 1 or in_planes != planes:
        sc = _conv_bn_ref(x, params["w_sc"], params["bn_sc"], stride=stride, padding=0, relu=False)
    else:
        sc = x.astype(jnp.bfloat16).astype(jnp.float32)

    out = jnp.maximum(out2 + sc, 0.0)
    return jnp.transpose(out, (0, 3, 1, 2))


# ----------------------------------------------------------------------------
if __name__ == "__main__":
    key = jax.random.PRNGKey(0)

    def bn_params(k, c):
        k1, k2, k3, k4 = jax.random.split(k, 4)
        gamma = 1.0 + 0.1 * jax.random.normal(k1, (c,), jnp.float32)
        beta = 0.1 * jax.random.normal(k2, (c,), jnp.float32)
        mean = 0.1 * jax.random.normal(k3, (c,), jnp.float32)
        var = jnp.abs(jax.random.normal(k4, (c,), jnp.float32)) + 0.5
        return (gamma, beta, mean, var)

    def make_params(k, in_planes, planes, with_sc):
        ks = jax.random.split(k, 6)
        p = {
            "w1": 0.1 * jax.random.normal(ks[0], (planes, in_planes, 3, 3), jnp.float32),
            "w2": 0.1 * jax.random.normal(ks[1], (planes, planes, 3, 3), jnp.float32),
            "bn1": bn_params(ks[2], planes),
            "bn2": bn_params(ks[3], planes),
        }
        if with_sc:
            p["w_sc"] = 0.1 * jax.random.normal(ks[4], (planes, in_planes, 1, 1), jnp.float32)
            p["bn_sc"] = bn_params(ks[5], planes)
        return p

    fwd = jax.jit(basic_block_forward, static_argnames=("stride",))
    kA, kB, kxA, kxB = jax.random.split(key, 4)

    # Config A: down-sampling block (stride 2, 4 -> 8 planes, conv+BN shortcut).
    N, in_planes, H, W, planes, stride = 2, 4, 16, 16, 8, 2
    paramsA = make_params(kA, in_planes, planes, with_sc=True)
    xA = jax.random.normal(kxA, (N, in_planes, H, W), jnp.float32)
    outA = jax.block_until_ready(fwd(xA, paramsA, stride=stride))
    refA = basic_block_ref(xA, paramsA, stride=stride)
    assert outA.shape == (N, planes, H // stride, W // stride), outA.shape
    errA = float(jnp.max(jnp.abs(outA - refA)))
    assert errA < 1e-2, errA

    # Config B: identity-shortcut block (stride 1, 8 -> 8 planes).
    paramsB = make_params(kB, planes, planes, with_sc=False)
    xB = jax.random.normal(kxB, (N, planes, 8, 8), jnp.float32)
    outB = jax.block_until_ready(fwd(xB, paramsB, stride=1))
    refB = basic_block_ref(xB, paramsB, stride=1)
    assert outB.shape == (N, planes, 8, 8), outB.shape
    errB = float(jnp.max(jnp.abs(outB - refB)))
    assert errB < 1e-2, errB

    print("KERNEL_OK")
</pallas_src>

<mosaic_0001>
module attributes {stable_mosaic.version = 11 : i64} {
  func.func @_basic_block_kernel(%arg0: i32, %arg1: memref<1x4x9x9x4xbf16, #tpu.memory_space<vmem>>, %arg2: memref<1x8x8x4xbf16, #tpu.memory_space<vmem>>, %arg3: memref<9x4x128xbf16, #tpu.memory_space<vmem>>, %arg4: memref<1x128xf32, #tpu.memory_space<vmem>>, %arg5: memref<9x128x128xbf16, #tpu.memory_space<vmem>>, %arg6: memref<1x128xf32, #tpu.memory_space<vmem>>, %arg7: memref<4x128xbf16, #tpu.memory_space<vmem>>, %arg8: memref<1x128xf32, #tpu.memory_space<vmem>>, %arg9: memref<1x8x8x128xf32, #tpu.memory_space<vmem>>, %arg10: memref<10x10x128xbf16, #tpu.memory_space<vmem>>) attributes {dimension_semantics = [#tpu.dimension_semantics<parallel>], iteration_bounds = array<i64: 2>, scalar_prefetch = 0 : i64, scratch_operands = 1 : i64, tpu.core_type = #tpu.core_type<tc>, window_params = [{transform_indices = @transform_0, window_bounds = array<i64: 1, 4, 9, 9, 4>}, {transform_indices = @transform_1, window_bounds = array<i64: 1, 8, 8, 4>}, {pipeline_mode = #tpu.pipeline_mode<synchronous>, transform_indices = @transform_2, window_bounds = array<i64: 9, 4, 128>}, {pipeline_mode = #tpu.pipeline_mode<synchronous>, transform_indices = @transform_3, window_bounds = array<i64: 1, 128>}, {pipeline_mode = #tpu.pipeline_mode<synchronous>, transform_indices = @transform_4, window_bounds = array<i64: 9, 128, 128>}, {pipeline_mode = #tpu.pipeline_mode<synchronous>, transform_indices = @transform_5, window_bounds = array<i64: 1, 128>}, {pipeline_mode = #tpu.pipeline_mode<synchronous>, transform_indices = @transform_6, window_bounds = array<i64: 4, 128>}, {pipeline_mode = #tpu.pipeline_mode<synchronous>, transform_indices = @transform_7, window_bounds = array<i64: 1, 128>}, {transform_indices = @transform_8, window_bounds = array<i64: 1, 8, 8, 128>}]} {
    %cst = arith.constant 0.000000e+00 : bf16
    %0 = vector.broadcast %cst : bf16 to vector<10x10x128xbf16>
    %c0 = arith.constant 0 : index
    %c0_0 = arith.constant 0 : index
    %c0_1 = arith.constant 0 : index
    %1 = vector.load %arg10[%c0, %c0_0, %c0_1] : memref<10x10x128xbf16, #tpu.memory_space<vmem>>, vector<10x10x128xbf16>
    tpu.vector_store %arg10[%c0, %c0_0, %c0_1], %0 {strides = array<i32>} : memref<10x10x128xbf16, #tpu.memory_space<vmem>>, vector<10x10x128xbf16>,
    %cst_2 = arith.constant 0.000000e+00 : f32
    %2 = vector.broadcast %cst_2 : f32 to vector<64x128xf32>
    %c0_3 = arith.constant 0 : index
    %c0_4 = arith.constant 0 : index
    %c0_5 = arith.constant 0 : index
    %c0_6 = arith.constant 0 : index
    %c0_7 = arith.constant 0 : index
    %3 = vector.load %arg1[%c0_3, %c0_4, %c0_5, %c0_6, %c0_7] : memref<1x4x9x9x4xbf16, #tpu.memory_space<vmem>>, vector<1x1x8x8x4xbf16>
    %4 = vector.shape_cast %3 : vector<1x1x8x8x4xbf16> to vector<8x8x4xbf16>
    %5 = vector.shape_cast %4 : vector<8x8x4xbf16> to vector<64x4xbf16>
    %c0_8 = arith.constant 0 : index
    %c0_9 = arith.constant 0 : index
    %c0_10 = arith.constant 0 : index
    %6 = vector.load %arg3[%c0_8, %c0_9, %c0_10] : memref<9x4x128xbf16, #tpu.memory_space<vmem>>, vector<1x4x128xbf16>
    %7 = vector.shape_cast %6 : vector<1x4x128xbf16> to vector<4x128xbf16>
    %cst_11 = arith.constant dense<0.000000e+00> : vector<64x128xf32>
    %8 = tpu.matmul %5, %7, %cst_11 {dimension_numbers = #tpu.dot_dimension_numbers<[1], [0], [0], [1], [0, 0, 1, 1], [], []>} : vector<64x4xbf16>, vector<4x128xbf16>, vector<64x128xf32> -> vector<64x128xf32>
    %9 = arith.addf %2, %8 : vector<64x128xf32>
    %c0_12 = arith.constant 0 : index
    %c1 = arith.constant 1 : index
    %c0_13 = arith.constant 0 : index
    %c0_14 = arith.constant 0 : index
    %c0_15 = arith.constant 0 : index
    %10 = vector.load %arg1[%c0_12, %c1, %c0_13, %c0_14, %c0_15] : memref<1x4x9x9x4xbf16, #tpu.memory_space<vmem>>, vector<1x1x8x8x4xbf16>
    %11 = vector.shape_cast %10 : vector<1x1x8x8x4xbf16> to vector<8x8x4xbf16>
    %12 = vector.shape_cast %11 : vector<8x8x4xbf16> to vector<64x4xbf16>
    %c1_16 = arith.constant 1 : index
    %c0_17 = arith.constant 0 : index
    %c0_18 = arith.constant 0 : index
    %13 = vector.load %arg3[%c1_16, %c0_17, %c0_18] : memref<9x4x128xbf16, #tpu.memory_space<vmem>>, vector<1x4x128xbf16>
    %14 = vector.shape_cast %13 : vector<1x4x128xbf16> to vector<4x128xbf16>
    %cst_19 = arith.constant dense<0.000000e+00> : vector<64x128xf32>
    %15 = tpu.matmul %12, %14, %cst_19 {dimension_numbers = #tpu.dot_dimension_numbers<[1], [0], [0], [1], [0, 0, 1, 1], [], []>} : vector<64x4xbf16>, vector<4x128xbf16>, vector<64x128xf32> -> vector<64x128xf32>
    %16 = arith.addf %9, %15 : vector<64x128xf32>
    %c0_20 = arith.constant 0 : index
    %c0_21 = arith.constant 0 : index
    %c0_22 = arith.constant 0 : index
    %c1_23 = arith.constant 1 : index
    %c0_24 = arith.constant 0 : index
    %17 = vector.load %arg1[%c0_20, %c0_21, %c0_22, %c1_23, %c0_24] : memref<1x4x9x9x4xbf16, #tpu.memory_space<vmem>>, vector<1x1x8x8x4xbf16>
    %18 = vector.shape_cast %17 : vector<1x1x8x8x4xbf16> to vector<8x8x4xbf16>
    %19 = vector.shape_cast %18 : vector<8x8x4xbf16> to vector<64x4xbf16>
    %c2 = arith.constant 2 : index
    %c0_25 = arith.constant 0 : index
    %c0_26 = arith.constant 0 : index
    %20 = vector.load %arg3[%c2, %c0_25, %c0_26] : memref<9x4x128xbf16, #tpu.memory_space<vmem>>, vector<1x4x128xbf16>
    %21 = vector.shape_cast %20 : vector<1x4x128xbf16> to vector<4x128xbf16>
    %cst_27 = arith.constant dense<0.000000e+00> : vector<64x128xf32>
    %22 = tpu.matmul %19, %21, %cst_27 {dimension_numbers = #tpu.dot_dimension_numbers<[1], [0], [0], [1], [0, 0, 1, 1], [], []>} : vector<64x4xbf16>, vector<4x128xbf16>, vector<64x128xf32> -> vector<64x128xf32>
    %23 = arith.addf %16, %22 : vector<64x128xf32>
    %c0_28 = arith.constant 0 : index
    %c2_29 = arith.constant 2 : index
    %c0_30 = arith.constant 0 : index
    %c0_31 = arith.constant 0 : index
    %c0_32 = arith.constant 0 : index
    %24 = vector.load %arg1[%c0_28, %c2_29, %c0_30, %c0_31, %c0_32] : memref<1x4x9x9x4xbf16, #tpu.memory_space<vmem>>, vector<1x1x8x8x4xbf16>
    %25 = vector.shape_cast %24 : vector<1x1x8x8x4xbf16> to vector<8x8x4xbf16>
    %26 = vector.shape_cast %25 : vector<8x8x4xbf16> to vector<64x4xbf16>
    %c3 = arith.constant 3 : index
    %c0_33 = arith.constant 0 : index
    %c0_34 = arith.constant 0 : index
    %27 = vector.load %arg3[%c3, %c0_33, %c0_34] : memref<9x4x128xbf16, #tpu.memory_space<vmem>>, vector<1x4x128xbf16>
    %28 = vector.shape_cast %27 : vector<1x4x128xbf16> to vector<4x128xbf16>
    %cst_35 = arith.constant dense<0.000000e+00> : vector<64x128xf32>
    %29 = tpu.matmul %26, %28, %cst_35 {dimension_numbers = #tpu.dot_dimension_numbers<[1], [0], [0], [1], [0, 0, 1, 1], [], []>} : vector<64x4xbf16>, vector<4x128xbf16>, vector<64x128xf32> -> vector<64x128xf32>
    %30 = arith.addf %23, %29 : vector<64x128xf32>
    %c0_36 = arith.constant 0 : index
    %c3_37 = arith.constant 3 : index
    %c0_38 = arith.constant 0 : index
    %c0_39 = arith.constant 0 : index
    %c0_40 = arith.constant 0 : index
    %31 = vector.load %arg1[%c0_36, %c3_37, %c0_38, %c0_39, %c0_40] : memref<1x4x9x9x4xbf16, #tpu.memory_space<vmem>>, vector<1x1x8x8x4xbf16>
    %32 = vector.shape_cast %31 : vector<1x1x8x8x4xbf16> to vector<8x8x4xbf16>
    %33 = vector.shape_cast %32 : vector<8x8x4xbf16> to vector<64x4xbf16>
    %c4 = arith.constant 4 : index
    %c0_41 = arith.constant 0 : index
    %c0_42 = arith.constant 0 : index
    %34 = vector.load %arg3[%c4, %c0_41, %c0_42] : memref<9x4x128xbf16, #tpu.memory_space<vmem>>, vector<1x4x128xbf16>
    %35 = vector.shape_cast %34 : vector<1x4x128xbf16> to vector<4x128xbf16>
    %cst_43 = arith.constant dense<0.000000e+00> : vector<64x128xf32>
    %36 = tpu.matmul %33, %35, %cst_43 {dimension_numbers = #tpu.dot_dimension_numbers<[1], [0], [0], [1], [0, 0, 1, 1], [], []>} : vector<64x4xbf16>, vector<4x128xbf16>, vector<64x128xf32> -> vector<64x128xf32>
    %37 = arith.addf %30, %36 : vector<64x128xf32>
    %c0_44 = arith.constant 0 : index
    %c2_45 = arith.constant 2 : index
    %c0_46 = arith.constant 0 : index
    %c1_47 = arith.constant 1 : index
    %c0_48 = arith.constant 0 : index
    %38 = vector.load %arg1[%c0_44, %c2_45, %c0_46, %c1_47, %c0_48] : memref<1x4x9x9x4xbf16, #tpu.memory_space<vmem>>, vector<1x1x8x8x4xbf16>
    %39 = vector.shape_cast %38 : vector<1x1x8x8x4xbf16> to vector<8x8x4xbf16>
    %40 = vector.shape_cast %39 : vector<8x8x4xbf16> to vector<64x4xbf16>
    %c5 = arith.constant 5 : index
    %c0_49 = arith.constant 0 : index
    %c0_50 = arith.constant 0 : index
    %41 = vector.load %arg3[%c5, %c0_49, %c0_50] : memref<9x4x128xbf16, #tpu.memory_space<vmem>>, vector<1x4x128xbf16>
    %42 = vector.shape_cast %41 : vector<1x4x128xbf16> to vector<4x128xbf16>
    %cst_51 = arith.constant dense<0.000000e+00> : vector<64x128xf32>
    %43 = tpu.matmul %40, %42, %cst_51 {dimension_numbers = #tpu.dot_dimension_numbers<[1], [0], [0], [1], [0, 0, 1, 1], [], []>} : vector<64x4xbf16>, vector<4x128xbf16>, vector<64x128xf32> -> vector<64x128xf32>
    %44 = arith.addf %37, %43 : vector<64x128xf32>
    %c0_52 = arith.constant 0 : index
    %c0_53 = arith.constant 0 : index
    %c1_54 = arith.constant 1 : index
    %c0_55 = arith.constant 0 : index
    %c0_56 = arith.constant 0 : index
    %45 = vector.load %arg1[%c0_52, %c0_53, %c1_54, %c0_55, %c0_56] : memref<1x4x9x9x4xbf16, #tpu.memory_space<vmem>>, vector<1x1x8x8x4xbf16>
    %46 = vector.shape_cast %45 : vector<1x1x8x8x4xbf16> to vector<8x8x4xbf16>
    %47 = vector.shape_cast %46 : vector<8x8x4xbf16> to vector<64x4xbf16>
    %c6 = arith.constant 6 : index
    %c0_57 = arith.constant 0 : index
    %c0_58 = arith.constant 0 : index
    %48 = vector.load %arg3[%c6, %c0_57, %c0_58] : memref<9x4x128xbf16, #tpu.memory_space<vmem>>, vector<1x4x128xbf16>
    %49 = vector.shape_cast %48 : vector<1x4x128xbf16> to vector<4x128xbf16>
    %cst_59 = arith.constant dense<0.000000e+00> : vector<64x128xf32>
    %50 = tpu.matmul %47, %49, %cst_59 {dimension_numbers = #tpu.dot_dimension_numbers<[1], [0], [0], [1], [0, 0, 1, 1], [], []>} : vector<64x4xbf16>, vector<4x128xbf16>, vector<64x128xf32> -> vector<64x128xf32>
    %51 = arith.addf %44, %50 : vector<64x128xf32>
    %c0_60 = arith.constant 0 : index
    %c1_61 = arith.constant 1 : index
    %c1_62 = arith.constant 1 : index
    %c0_63 = arith.constant 0 : index
    %c0_64 = arith.constant 0 : index
    %52 = vector.load %arg1[%c0_60, %c1_61, %c1_62, %c0_63, %c0_64] : memref<1x4x9x9x4xbf16, #tpu.memory_space<vmem>>, vector<1x1x8x8x4xbf16>
    %53 = vector.shape_cast %52 : vector<1x1x8x8x4xbf16> to vector<8x8x4xbf16>
    %54 = vector.shape_cast %53 : vector<8x8x4xbf16> to vector<64x4xbf16>
    %c7 = arith.constant 7 : index
    %c0_65 = arith.constant 0 : index
    %c0_66 = arith.constant 0 : index
    %55 = vector.load %arg3[%c7, %c0_65, %c0_66] : memref<9x4x128xbf16, #tpu.memory_space<vmem>>, vector<1x4x128xbf16>
    %56 = vector.shape_cast %55 : vector<1x4x128xbf16> to vector<4x128xbf16>
    %cst_67 = arith.constant dense<0.000000e+00> : vector<64x128xf32>
    %57 = tpu.matmul %54, %56, %cst_67 {dimension_numbers = #tpu.dot_dimension_numbers<[1], [0], [0], [1], [0, 0, 1, 1], [], []>} : vector<64x4xbf16>, vector<4x128xbf16>, vector<64x128xf32> -> vector<64x128xf32>
    %58 = arith.addf %51, %57 : vector<64x128xf32>
    %c0_68 = arith.constant 0 : index
    %c0_69 = arith.constant 0 : index
    %c1_70 = arith.constant 1 : index
    %c1_71 = arith.constant 1 : index
    %c0_72 = arith.constant 0 : index
    %59 = vector.load %arg1[%c0_68, %c0_69, %c1_70, %c1_71, %c0_72] : memref<1x4x9x9x4xbf16, #tpu.memory_space<vmem>>, vector<1x1x8x8x4xbf16>
    %60 = vector.shape_cast %59 : vector<1x1x8x8x4xbf16> to vector<8x8x4xbf16>
    %61 = vector.shape_cast %60 : vector<8x8x4xbf16> to vector<64x4xbf16>
    %c8 = arith.constant 8 : index
    %c0_73 = arith.constant 0 : index
    %c0_74 = arith.constant 0 : index
    %62 = vector.load %arg3[%c8, %c0_73, %c0_74] : memref<9x4x128xbf16, #tpu.memory_space<vmem>>, vector<1x4x128xbf16>
    %63 = vector.shape_cast %62 : vector<1x4x128xbf16> to vector<4x128xbf16>
    %cst_75 = arith.constant dense<0.000000e+00> : vector<64x128xf32>
    %64 = tpu.matmul %61, %63, %cst_75 {dimension_numbers = #tpu.dot_dimension_numbers<[1], [0], [0], [1], [0, 0, 1, 1], [], []>} : vector<64x4xbf16>, vector<4x128xbf16>, vector<64x128xf32> -> vector<64x128xf32>
    %65 = arith.addf %58, %64 : vector<64x128xf32>
    %c0_76 = arith.constant 0 : index
    %c0_77 = arith.constant 0 : index
    %66 = vector.load %arg4[%c0_76, %c0_77] : memref<1x128xf32, #tpu.memory_space<vmem>>, vector<1x128xf32>
    %67 = vector.broadcast %66 : vector<1x128xf32> to vector<64x128xf32>
    %68 = arith.addf %65, %67 : vector<64x128xf32>
    %cst_78 = arith.constant 0.000000e+00 : f32
    %69 = vector.broadcast %cst_78 : f32 to vector<64x128xf32>
    %70 = arith.maximumf %68, %69 : vector<64x128xf32>
    %71 = vector.shape_cast %70 : vector<64x128xf32> to vector<8x8x128xf32>
    %72 = arith.truncf %71 : vector<8x8x128xf32> to vector<8x8x128xbf16>
    %c1_79 = arith.constant 1 : index
    %c1_80 = arith.constant 1 : index
    %c0_81 = arith.constant 0 : index
    %73 = vector.load %arg10[%c1_79, %c1_80, %c0_81] : memref<10x10x128xbf16, #tpu.memory_space<vmem>>, vector<8x8x128xbf16>
    tpu.vector_store %arg10[%c1_79, %c1_80, %c0_81], %72 {strides = array<i32>} : memref<10x10x128xbf16, #tpu.memory_space<vmem>>, vector<8x8x128xbf16>,
    %cst_82 = arith.constant 0.000000e+00 : f32
    %74 = vector.broadcast %cst_82 : f32 to vector<64x128xf32>
    %c0_83 = arith.constant 0 : index
    %c0_84 = arith.constant 0 : index
    %c0_85 = arith.constant 0 : index
    %75 = vector.load %arg10[%c0_83, %c0_84, %c0_85] : memref<10x10x128xbf16, #tpu.memory_space<vmem>>, vector<8x8x128xbf16>
    %76 = vector.shape_cast %75 : vector<8x8x128xbf16> to vector<64x128xbf16>
    %c0_86 = arith.constant 0 : index
    %c0_87 = arith.constant 0 : index
    %c0_88 = arith.constant 0 : index
    %77 = vector.load %arg5[%c0_86, %c0_87, %c0_88] : memref<9x128x128xbf16, #tpu.memory_space<vmem>>, vector<1x128x128xbf16>
    %78 = vector.shape_cast %77 : vector<1x128x128xbf16> to vector<128x128xbf16>
    %cst_89 = arith.constant dense<0.000000e+00> : vector<64x128xf32>
    %79 = tpu.matmul %76, %78, %cst_89 {dimension_numbers = #tpu.dot_dimension_numbers<[1], [0], [0], [1], [0, 0, 1, 1], [], []>} : vector<64x128xbf16>, vector<128x128xbf16>, vector<64x128xf32> -> vector<64x128xf32>
    %80 = arith.addf %74, %79 : vector<64x128xf32>
    %c0_90 = arith.constant 0 : index
    %c1_91 = arith.constant 1 : index
    %c0_92 = arith.constant 0 : index
    %81 = vector.load %arg10[%c0_90, %c1_91, %c0_92] : memref<10x10x128xbf16, #tpu.memory_space<vmem>>, vector<8x8x128xbf16>
    %82 = vector.shape_cast %81 : vector<8x8x128xbf16> to vector<64x128xbf16>
    %c1_93 = arith.constant 1 : index
    %c0_94 = arith.constant 0 : index
    %c0_95 = arith.constant 0 : index
    %83 = vector.load %arg5[%c1_93, %c0_94, %c0_95] : memref<9x128x128xbf16, #tpu.memory_space<vmem>>, vector<1x128x128xbf16>
    %84 = vector.shape_cast %83 : vector<1x128x128xbf16> to vector<128x128xbf16>
    %cst_96 = arith.constant dense<0.000000e+00> : vector<64x128xf32>
    %85 = tpu.matmul %82, %84, %cst_96 {dimension_numbers = #tpu.dot_dimension_numbers<[1], [0], [0], [1], [0, 0, 1, 1], [], []>} : vector<64x128xbf16>, vector<128x128xbf16>, vector<64x128xf32> -> vector<64x128xf32>
    %86 = arith.addf %80, %85 : vector<64x128xf32>
    %c0_97 = arith.constant 0 : index
    %c2_98 = arith.constant 2 : index
    %c0_99 = arith.constant 0 : index
    %87 = vector.load %arg10[%c0_97, %c2_98, %c0_99] : memref<10x10x128xbf16, #tpu.memory_space<vmem>>, vector<8x8x128xbf16>
    %88 = vector.shape_cast %87 : vector<8x8x128xbf16> to vector<64x128xbf16>
    %c2_100 = arith.constant 2 : index
    %c0_101 = arith.constant 0 : index
    %c0_102 = arith.constant 0 : index
    %89 = vector.load %arg5[%c2_100, %c0_101, %c0_102] : memref<9x128x128xbf16, #tpu.memory_space<vmem>>, vector<1x128x128xbf16>
    %90 = vector.shape_cast %89 : vector<1x128x128xbf16> to vector<128x128xbf16>
    %cst_103 = arith.constant dense<0.000000e+00> : vector<64x128xf32>
    %91 = tpu.matmul %88, %90, %cst_103 {dimension_numbers = #tpu.dot_dimension_numbers<[1], [0], [0], [1], [0, 0, 1, 1], [], []>} : vector<64x128xbf16>, vector<128x128xbf16>, vector<64x128xf32> -> vector<64x128xf32>
    %92 = arith.addf %86, %91 : vector<64x128xf32>
    %c1_104 = arith.constant 1 : index
    %c0_105 = arith.constant 0 : index
    %c0_106 = arith.constant 0 : index
    %93 = vector.load %arg10[%c1_104, %c0_105, %c0_106] : memref<10x10x128xbf16, #tpu.memory_space<vmem>>, vector<8x8x128xbf16>
    %94 = vector.shape_cast %93 : vector<8x8x128xbf16> to vector<64x128xbf16>
    %c3_107 = arith.constant 3 : index
    %c0_108 = arith.constant 0 : index
    %c0_109 = arith.constant 0 : index
    %95 = vector.load %arg5[%c3_107, %c0_108, %c0_109] : memref<9x128x128xbf16, #tpu.memory_space<vmem>>, vector<1x128x128xbf16>
    %96 = vector.shape_cast %95 : vector<1x128x128xbf16> to vector<128x128xbf16>
    %cst_110 = arith.constant dense<0.000000e+00> : vector<64x128xf32>
    %97 = tpu.matmul %94, %96, %cst_110 {dimension_numbers = #tpu.dot_dimension_numbers<[1], [0], [0], [1], [0, 0, 1, 1], [], []>} : vector<64x128xbf16>, vector<128x128xbf16>, vector<64x128xf32> -> vector<64x128xf32>
    %98 = arith.addf %92, %97 : vector<64x128xf32>
    %c1_111 = arith.constant 1 : index
    %c1_112 = arith.constant 1 : index
    %c0_113 = arith.constant 0 : index
    %99 = vector.load %arg10[%c1_111, %c1_112, %c0_113] : memref<10x10x128xbf16, #tpu.memory_space<vmem>>, vector<8x8x128xbf16>
    %100 = vector.shape_cast %99 : vector<8x8x128xbf16> to vector<64x128xbf16>
    %c4_114 = arith.constant 4 : index
    %c0_115 = arith.constant 0 : index
    %c0_116 = arith.constant 0 : index
    %101 = vector.load %arg5[%c4_114, %c0_115, %c0_116] : memref<9x128x128xbf16, #tpu.memory_space<vmem>>, vector<1x128x128xbf16>
    %102 = vector.shape_cast %101 : vector<1x128x128xbf16> to vector<128x128xbf16>
    %cst_117 = arith.constant dense<0.000000e+00> : vector<64x128xf32>
    %103 = tpu.matmul %100, %102, %cst_117 {dimension_numbers = #tpu.dot_dimension_numbers<[1], [0], [0], [1], [0, 0, 1, 1], [], []>} : vector<64x128xbf16>, vector<128x128xbf16>, vector<64x128xf32> -> vector<64x128xf32>
    %104 = arith.addf %98, %103 : vector<64x128xf32>
    %c1_118 = arith.constant 1 : index
    %c2_119 = arith.constant 2 : index
    %c0_120 = arith.constant 0 : index
    %105 = vector.load %arg10[%c1_118, %c2_119, %c0_120] : memref<10x10x128xbf16, #tpu.memory_space<vmem>>, vector<8x8x128xbf16>
    %106 = vector.shape_cast %105 : vector<8x8x128xbf16> to vector<64x128xbf16>
    %c5_121 = arith.constant 5 : index
    %c0_122 = arith.constant 0 : index
    %c0_123 = arith.constant 0 : index
    %107 = vector.load %arg5[%c5_121, %c0_122, %c0_123] : memref<9x128x128xbf16, #tpu.memory_space<vmem>>, vector<1x128x128xbf16>
    %108 = vector.shape_cast %107 : vector<1x128x128xbf16> to vector<128x128xbf16>
    %cst_124 = arith.constant dense<0.000000e+00> : vector<64x128xf32>
    %109 = tpu.matmul %106, %108, %cst_124 {dimension_numbers = #tpu.dot_dimension_numbers<[1], [0], [0], [1], [0, 0, 1, 1], [], []>} : vector<64x128xbf16>, vector<128x128xbf16>, vector<64x128xf32> -> vector<64x128xf32>
    %110 = arith.addf %104, %109 : vector<64x128xf32>
    %c2_125 = arith.constant 2 : index
    %c0_126 = arith.constant 0 : index
    %c0_127 = arith.constant 0 : index
    %111 = vector.load %arg10[%c2_125, %c0_126, %c0_127] : memref<10x10x128xbf16, #tpu.memory_space<vmem>>, vector<8x8x128xbf16>
    %112 = vector.shape_cast %111 : vector<8x8x128xbf16> to vector<64x128xbf16>
    %c6_128 = arith.constant 6 : index
    %c0_129 = arith.constant 0 : index
    %c0_130 = arith.constant 0 : index
    %113 = vector.load %arg5[%c6_128, %c0_129, %c0_130] : memref<9x128x128xbf16, #tpu.memory_space<vmem>>, vector<1x128x128xbf16>
    %114 = vector.shape_cast %113 : vector<1x128x128xbf16> to vector<128x128xbf16>
    %cst_131 = arith.constant dense<0.000000e+00> : vector<64x128xf32>
    %115 = tpu.matmul %112, %114, %cst_131 {dimension_numbers = #tpu.dot_dimension_numbers<[1], [0], [0], [1], [0, 0, 1, 1], [], []>} : vector<64x128xbf16>, vector<128x128xbf16>, vector<64x128xf32> -> vector<64x128xf32>
    %116 = arith.addf %110, %115 : vector<64x128xf32>
    %c2_132 = arith.constant 2 : index
    %c1_133 = arith.constant 1 : index
    %c0_134 = arith.constant 0 : index
    %117 = vector.load %arg10[%c2_132, %c1_133, %c0_134] : memref<10x10x128xbf16, #tpu.memory_space<vmem>>, vector<8x8x128xbf16>
    %118 = vector.shape_cast %117 : vector<8x8x128xbf16> to vector<64x128xbf16>
    %c7_135 = arith.constant 7 : index
    %c0_136 = arith.constant 0 : index
    %c0_137 = arith.constant 0 : index
    %119 = vector.load %arg5[%c7_135, %c0_136, %c0_137] : memref<9x128x128xbf16, #tpu.memory_space<vmem>>, vector<1x128x128xbf16>
    %120 = vector.shape_cast %119 : vector<1x128x128xbf16> to vector<128x128xbf16>
    %cst_138 = arith.constant dense<0.000000e+00> : vector<64x128xf32>
    %121 = tpu.matmul %118, %120, %cst_138 {dimension_numbers = #tpu.dot_dimension_numbers<[1], [0], [0], [1], [0, 0, 1, 1], [], []>} : vector<64x128xbf16>, vector<128x128xbf16>, vector<64x128xf32> -> vector<64x128xf32>
    %122 = arith.addf %116, %121 : vector<64x128xf32>
    %c2_139 = arith.constant 2 : index
    %c2_140 = arith.constant 2 : index
    %c0_141 = arith.constant 0 : index
    %123 = vector.load %arg10[%c2_139, %c2_140, %c0_141] : memref<10x10x128xbf16, #tpu.memory_space<vmem>>, vector<8x8x128xbf16>
    %124 = vector.shape_cast %123 : vector<8x8x128xbf16> to vector<64x128xbf16>
    %c8_142 = arith.constant 8 : index
    %c0_143 = arith.constant 0 : index
    %c0_144 = arith.constant 0 : index
    %125 = vector.load %arg5[%c8_142, %c0_143, %c0_144] : memref<9x128x128xbf16, #tpu.memory_space<vmem>>, vector<1x128x128xbf16>
    %126 = vector.shape_cast %125 : vector<1x128x128xbf16> to vector<128x128xbf16>
    %cst_145 = arith.constant dense<0.000000e+00> : vector<64x128xf32>
    %127 = tpu.matmul %124, %126, %cst_145 {dimension_numbers = #tpu.dot_dimension_numbers<[1], [0], [0], [1], [0, 0, 1, 1], [], []>} : vector<64x128xbf16>, vector<128x128xbf16>, vector<64x128xf32> -> vector<64x128xf32>
    %128 = arith.addf %122, %127 : vector<64x128xf32>
    %c0_146 = arith.constant 0 : index
    %c0_147 = arith.constant 0 : index
    %c0_148 = arith.constant 0 : index
    %c0_149 = arith.constant 0 : index
    %129 = vector.load %arg2[%c0_146, %c0_147, %c0_148, %c0_149] : memref<1x8x8x4xbf16, #tpu.memory_space<vmem>>, vector<1x8x8x4xbf16>
    %130 = vector.shape_cast %129 : vector<1x8x8x4xbf16> to vector<8x8x4xbf16>
    %131 = vector.shape_cast %130 : vector<8x8x4xbf16> to vector<64x4xbf16>
    %c0_150 = arith.constant 0 : index
    %c0_151 = arith.constant 0 : index
    %132 = vector.load %arg7[%c0_150, %c0_151] : memref<4x128xbf16, #tpu.memory_space<vmem>>, vector<4x128xbf16>
    %cst_152 = arith.constant dense<0.000000e+00> : vector<64x128xf32>
    %133 = tpu.matmul %131, %132, %cst_152 {dimension_numbers = #tpu.dot_dimension_numbers<[1], [0], [0], [1], [0, 0, 1, 1], [], []>} : vector<64x4xbf16>, vector<4x128xbf16>, vector<64x128xf32> -> vector<64x128xf32>
    %c0_153 = arith.constant 0 : index
    %c0_154 = arith.constant 0 : index
    %134 = vector.load %arg8[%c0_153, %c0_154] : memref<1x128xf32, #tpu.memory_space<vmem>>, vector<1x128xf32>
    %135 = vector.broadcast %134 : vector<1x128xf32> to vector<64x128xf32>
    %136 = arith.addf %133, %135 : vector<64x128xf32>
    %c0_155 = arith.constant 0 : index
    %c0_156 = arith.constant 0 : index
    %137 = vector.load %arg6[%c0_155, %c0_156] : memref<1x128xf32, #tpu.memory_space<vmem>>, vector<1x128xf32>
    %138 = vector.broadcast %137 : vector<1x128xf32> to vector<64x128xf32>
    %139 = arith.addf %128, %138 : vector<64x128xf32>
    %140 = arith.addf %139, %136 : vector<64x128xf32>
    %cst_157 = arith.constant 0.000000e+00 : f32
    %141 = vector.broadcast %cst_157 : f32 to vector<64x128xf32>
    %142 = arith.maximumf %140, %141 : vector<64x128xf32>
    %143 = vector.shape_cast %142 : vector<64x128xf32> to vector<1x8x8x128xf32>
    %c0_158 = arith.constant 0 : index
    %c0_159 = arith.constant 0 : index
    %c0_160 = arith.constant 0 : index
    %c0_161 = arith.constant 0 : index
    %144 = vector.load %arg9[%c0_158, %c0_159, %c0_160, %c0_161] : memref<1x8x8x128xf32, #tpu.memory_space<vmem>>, vector<1x8x8x128xf32>
    tpu.vector_store %arg9[%c0_158, %c0_159, %c0_160, %c0_161], %143 {strides = array<i32>} : memref<1x8x8x128xf32, #tpu.memory_space<vmem>>, vector<1x8x8x128xf32>,
    return
  }
  func.func @transform_0(%arg0: i32) -> (i32, i32, i32, i32, i32) {
    %c0_i32 = arith.constant 0 : i32
    %c0_i32_0 = arith.constant 0 : i32
    %c0_i32_1 = arith.constant 0 : i32
    %c0_i32_2 = arith.constant 0 : i32
    %c0_i32_3 = arith.constant 0 : i32
    return %arg0, %c0_i32, %c0_i32_0, %c0_i32_1, %c0_i32_2 : i32, i32, i32, i32, i32
  }
  func.func @transform_1(%arg0: i32) -> (i32, i32, i32, i32) {
    %c0_i32 = arith.constant 0 : i32
    %c0_i32_0 = arith.constant 0 : i32
    %c0_i32_1 = arith.constant 0 : i32
    %c0_i32_2 = arith.constant 0 : i32
    return %arg0, %c0_i32, %c0_i32_0, %c0_i32_1 : i32, i32, i32, i32
  }
  func.func @transform_2(%arg0: i32) -> (i32, i32, i32) {
    %c0_i32 = arith.constant 0 : i32
    %c0_i32_0 = arith.constant 0 : i32
    %c0_i32_1 = arith.constant 0 : i32
    %c0_i32_2 = arith.constant 0 : i32
    return %c0_i32, %c0_i32_0, %c0_i32_1 : i32, i32, i32
  }
  func.func @transform_3(%arg0: i32) -> (i32, i32) {
    %c0_i32 = arith.constant 0 : i32
    %c0_i32_0 = arith.constant 0 : i32
    %c0_i32_1 = arith.constant 0 : i32
    return %c0_i32, %c0_i32_0 : i32, i32
  }
  func.func @transform_4(%arg0: i32) -> (i32, i32, i32) {
    %c0_i32 = arith.constant 0 : i32
    %c0_i32_0 = arith.constant 0 : i32
    %c0_i32_1 = arith.constant 0 : i32
    %c0_i32_2 = arith.constant 0 : i32
    return %c0_i32, %c0_i32_0, %c0_i32_1 : i32, i32, i32
  }
  func.func @transform_5(%arg0: i32) -> (i32, i32) {
    %c0_i32 = arith.constant 0 : i32
    %c0_i32_0 = arith.constant 0 : i32
    %c0_i32_1 = arith.constant 0 : i32
    return %c0_i32, %c0_i32_0 : i32, i32
  }
  func.func @transform_6(%arg0: i32) -> (i32, i32) {
    %c0_i32 = arith.constant 0 : i32
    %c0_i32_0 = arith.constant 0 : i32
    %c0_i32_1 = arith.constant 0 : i32
    return %c0_i32, %c0_i32_0 : i32, i32
  }
  func.func @transform_7(%arg0: i32) -> (i32, i32) {
    %c0_i32 = arith.constant 0 : i32
    %c0_i32_0 = arith.constant 0 : i32
    %c0_i32_1 = arith.constant 0 : i32
    return %c0_i32, %c0_i32_0 : i32, i32
  }
  func.func @transform_8(%arg0: i32) -> (i32, i32, i32, i32) {
    %c0_i32 = arith.constant 0 : i32
    %c0_i32_0 = arith.constant 0 : i32
    %c0_i32_1 = arith.constant 0 : i32
    %c0_i32_2 = arith.constant 0 : i32
    return %arg0, %c0_i32, %c0_i32_0, %c0_i32_1 : i32, i32, i32, i32
  }
}

</mosaic_0001>

<bundles_post_ra>
// kernel: basic_block_forward.1
= control target key start
LH: loop header
LB: loop body
LE: loop exit
PB: predicated region body
PF: predicated region fallthrough
CT: control target
= control target key end

     0   :  { %s4314_s27 = smov 0   ;;  %s5361_s0 = inlined_call_operand.vmem [shape: bf16[2,4,9,9,4], index: 0, kind: input, shape index: {}]   ;;  %s5362_s1 = inlined_call_operand.vmem [shape: bf16[2,8,8,4], index: 1, kind: input, shape index: {}]   ;;  %s5363_s2 = inlined_call_operand.vmem [shape: bf16[9,4,128], index: 2, kind: input, shape index: {}]   ;;  %s5364_s3 = inlined_call_operand.vmem [shape: f32[1,128], index: 3, kind: input, shape index: {}]   ;;  %s5365_s4 = inlined_call_operand.vmem [shape: bf16[9,128,128], index: 4, kind: input, shape index: {}]   ;;  %s5366_s5 = inlined_call_operand.vmem [shape: f32[1,128], index: 5, kind: input, shape index: {}]   ;;  %s5367_s6 = inlined_call_operand.vmem [shape: bf16[4,128], index: 6, kind: input, shape index: {}]   ;;  %s5368_s7 = inlined_call_operand.vmem [shape: f32[1,128], index: 7, kind: input, shape index: {}]   ;;  %s5369_s8 = inlined_call_operand.vmem [shape: f32[2,8,8,128], index: 8, kind: output, shape index: {}]  }
   0x1 LB: > { %s3398_s28 = sadd.s32 4294967295, %s4266_s27   ;;  %p3402_p0 = scmp.ge.s32.totalorder %s4266_s27, 1  ;;  %s4266_s27 = sphi %s4314_s27, %s18_s27  }
   0x2   : > { %p272_p1 = scmp.lt.s32.totalorder %s4266_s27, 3 }
   0x4   : > { %p273_p2 = pnand %p3402_p0, %p272_p1 }
   0x5   : > { %p311_p3 = scmp.lt.s32.totalorder (!%p273_p2), %s3398_s28, 1 }
   0x6   : > { %276 = sbr.rel (%p273_p2) target bundleno = 648 (0x288), region = 52 }
   0xb   : > { %v3416_v0 = vld [vmem:[%s5363_s2 + $0x2] sm:$0x3]  ;;  %vm400_vm0 = vcmask 1041408   ;;  %v355_v2 = vld [vmem:[%s5363_s2] sm:$0x3]  ;;  %s5379_s28 = smov (!%p311_p3, %s3398_s28), 1 }
   0xc   : > { %v402_v1 = vsel %vm400_vm0, %v3416_v0, 0  ;;  %v3457_v3 = vld [vmem:[%s5363_s2 + $0x4] sm:$0x3]  ;;  %v466_v4 = vsel %vm400_vm0, %v355_v2, 0  ;;  %v3470_v6 = vld [vmem:[%s5363_s2 + $0x6] sm:$0x3] }
   0xd   : > { %411 = vmatpush.bf16.msra.mxu0 %v402_v1  ;;  %v655_v5 = vsel %vm400_vm0, %v3457_v3, 0  ;;  %s4247_s15 = smul.u32 288, %s5379_s28  ;;  %4244 = vmatpush.bf16.msra.mxu1 %v466_v4  ;;  %v738_v7 = vsel %vm400_vm0, %v3470_v6, 0  ;;  %vm387_vm1 = vcmask 31744   ;;  %vm513_vm2 = vsmask.f32 3328 }
   0xe   : > { %664 = vmatpush.bf16.msra.mxu2 %v655_v5  ;;  %4245 = vmatpush.bf16.msra.mxu3 %v655_v5  ;;  %vm514_vm3 = vsmask.f32 7440  ;;  %vm1523_vm5 = vcmask 1043456   ;;  %vm1524_vm6 = vsmask.f32 7938  ;;  %vm1529_vm7 = vcmask 1040384  }
   0xf   : > { %s4344_s18 = scalar_lea.vmem %s5361_s0, %s4247_s15  ;;  %vm4359_vm4 = vmor %vm513_vm2, %vm514_vm3  ;;  %vm1530_vm8 = vsmask.f32 256  ;;  %vm1956_vm11 = vcmask 1042432   ;;  %vm1957_vm12 = vcmask 1046532   ;;  %s4130_s17 = sshll.u32 %s5379_s28, 5 }
  0x10   : > { %v3419_v8 = vld [vmem:[%s4344_s18 + $0x48] sm:$0xf]  ;;  %v4136_v9 = vld [vmem:[%s4344_s18 + $0x4c] sm:$0xf0]  ;;  %v497_v10 = vld [vmem:[%s4344_s18] sm:$0xf]  ;;  %s320_s20 = scalar_lea.vmem %s5362_s1, %s4130_s17 }
  0x11   : > { %475 = vmatpush.bf16.msrb.mxu0 %v466_v4  ;;  %v3420_v11 = vor.u32 %v4136_v9, %v3419_v8  ;;  %v498_v12 = vld [vmem:[%s4344_s18 + $0x4] sm:$0x1]  ;;  %v499_v13 = vld [vmem:[%s4344_s18 + $0x8] sm:$0xf]  ;;  %v500_v14 = vld [vmem:[%s4344_s18 + $0xc] sm:$0x1] }
  0x12   : > { %747 = vmatpush.bf16.msrb.mxu3 %v738_v7  ;;  %v517_v15 = vshrl.u32 %v497_v10, 16  ;;  %v520_v16 = vshll.u32 %v497_v10, 16  ;;  %v526_v17 = vshll.u32 %v498_v12, 16  ;;  %v531_v18 = vshrl.u32 %v499_v13, 16  ;;  %v509_v19 = vld [vmem:[%s4344_s18 + $0x30] sm:$0xf]  ;;  %vm4782_vm9 = vmand %vm1523_vm5, %vm1524_vm6 }
  0x13   : > { %3433 = vmatmul.msk.bf16.vlgmr.msra.gmra.mxu0 %vm387_vm1, %v3420_v11  ;;  %v534_v20 = vshll.u32 %v499_v13, 16  ;;  %v540_v21 = vshll.u32 %v500_v14, 16  ;;  %v510_v22 = vld [vmem:[%s4344_s18 + $0x34] sm:$0x1]  ;;  %v511_v23 = vld [vmem:[%s4344_s18 + $0x38] sm:$0xf]  ;;  %vm4794_vm10 = vmand %vm1529_vm7, %vm1530_vm8 }
  0x14   : > { %v519_v24 = vrot.slane %v517_v15, 4  ;;  %v522_v25 = vrot.slane %v520_v16, 5  ;;  %v528_v26 = vrot.slane %v526_v17, 5  ;;  %v533_v27 = vrot.slane %v531_v18, 4  ;;  %v512_v28 = vld [vmem:[%s4344_s18 + $0x3c] sm:$0x1]  ;;  %vm4815_vm13 = vmor %vm1956_vm11, %vm1957_vm12 }
  0x15   : > { %v536_v29 = vrot.slane %v534_v20, 5  ;;  %v542_v30 = vrot.slane %v540_v21, 5  ;;  %v601_v31 = vshrl.u32 %v509_v19, 16  ;;  %v604_v32 = vshll.u32 %v509_v19, 16  ;;  %v3443_v42 = vld [vmem:[%s4344_s18 + $0x10] sm:$0xf] }
  0x16   : > { %v523_v33 = vor.u32 %v522_v25, %v519_v24  ;;  %v610_v34 = vshll.u32 %v510_v22, 16  ;;  %v615_v35 = vshrl.u32 %v511_v23, 16  ;;  %v618_v36 = vshll.u32 %v511_v23, 16  ;;  %v4133_v47 = vld [vmem:[%s4344_s18 + $0x14] sm:$0xf0]  ;;  %s4131_s25 = sshll.u32 %s5379_s28, 6 }
  0x17   : > { %v537_v38 = vor.u32 %v536_v29, %v533_v27  ;;  %v603_v39 = vrot.slane %v601_v31, 4  ;;  %v606_v40 = vrot.slane %v604_v32, 5  ;;  %v624_v41 = vshll.u32 %v512_v28, 16  ;;  %v501_v51 = vld [vmem:[%s4344_s18 + $0x10] sm:$0xf]  ;;  %s5313_s30 = scalar_lea.vmem %s5369_s8, %s4131_s25 }
  0x18   : > { %v524_v43 = vrot.slane %v523_v33, 4  ;;  %v612_v44 = vrot.slane %v610_v34, 5  ;;  %v617_v45 = vrot.slane %v615_v35, 4  ;;  %v620_v46 = vrot.slane %v618_v36, 5  ;;  %v502_v52 = vld [vmem:[%s4344_s18 + $0x14] sm:$0x1] }
  0x19   : > { %v538_v48 = vrot.slane %v537_v38, 4  ;;  %v607_v49 = vor.u32 %v606_v40, %v603_v39  ;;  %v626_v50 = vrot.slane %v624_v41, 5  ;;  %v3444_v55 = vor.u32 %v4133_v47, %v3443_v42  ;;  %v503_v56 = vld [vmem:[%s4344_s18 + $0x18] sm:$0xf]  ;;  %v4137_v62 = vld [vmem:[%s4344_s18 + $0x5c] sm:$0xf0] }
  0x1a   : > { %v529_v53 = vsel %vm4359_vm4, %v524_v43, %v528_v26  ;;  %v621_v54 = vor.u32 %v620_v46, %v617_v45  ;;  %v545_v57 = vshrl.u32 %v501_v51, 16  ;;  %v3423_v61 = vld [vmem:[%s4344_s18 + $0x58] sm:$0xf]  ;;  %v548_v63 = vshll.u32 %v501_v51, 16  ;;  %v504_v5 = vld [vmem:[%s4344_s18 + $0x1c] sm:$0x1] }
  0x1b   : > { %v543_v58 = vsel %vm4359_vm4, %v538_v48, %v542_v30  ;;  %v630_v59 = vunpack.c.l.b16 %v529_v53  ;;  %v608_v60 = vrot.slane %v607_v49, 4  ;;  %3454 = vmatmul.msk.bf16.vlgmr.msra.gmra.mxu1 %vm387_vm1, %v3444_v55  ;;  %v554_v3 = vshll.u32 %v502_v52, 16  ;;  %v3578_v17 = vld [vmem:[%s5363_s2 + $0xe] sm:$0x3]  ;;  %v505_v24 = vld [vmem:[%s4344_s18 + $0x20] sm:$0xf] }
  0x1c   : > { %v631_v0 = vunpack.c.l.b16 %v543_v58  ;;  %v622_v1 = vrot.slane %v621_v54, 4  ;;  %v547_v2 = vrot.slane %v545_v57, 4  ;;  %v550_v6 = vrot.slane %v548_v63, 5  ;;  %v507_v26 = vld [vmem:[%s4344_s18 + $0x28] sm:$0xf] }
  0x1d   : > { %v613_v4 = vsel %vm4359_vm4, %v608_v60, %v612_v44  ;;  %v559_v7 = vshrl.u32 %v503_v56, 16  ;;  %v562_v8 = vshll.u32 %v503_v56, 16  ;;  %v3424_v12 = vor.u32 %v4137_v62, %v3423_v61  ;;  %v3447_v32 = vld [vmem:[%s4344_s18 + $0x20] sm:$0xf]  ;;  %v4134_v33 = vld [vmem:[%s4344_s18 + $0x24] sm:$0xf0] }
  0x1e   : > { %v638_v9 = vpack.c.b16 %v631_v0, %v630_v59  ;;  %v627_v10 = vsel %vm4359_vm4, %v622_v1, %v626_v50  ;;  %v636_v11 = vunpack.c.l.b16 %v613_v4  ;;  %v551_v14 = vor.u32 %v550_v6, %v547_v2  ;;  %v506_v44 = vld [vmem:[%s4344_s18 + $0x24] sm:$0x1]  ;;  %v508_v45 = vld [vmem:[%s4344_s18 + $0x2c] sm:$0x1]  ;;  %v3473_v46 = vld [vmem:[%s4344_s18 + $0x90] sm:$0xf] }
  0x1f   : > { %v637_v13 = vunpack.c.l.b16 %v627_v10  ;;  %v561_v15 = vrot.slane %v559_v7, 4  ;;  %v564_v16 = vrot.slane %v562_v8, 5  ;;  %v556_v18 = vrot.slane %v554_v3, 5  ;;  %v4140_v48 = vld [vmem:[%s4344_s18 + $0x94] sm:$0xf0] }
  0x20   : > { %3458 = vmatmul.msk.bf16.vlgmr.msra.gmra.mxu2 %vm387_vm1, %v638_v9  ;;  %v568_v19 = vshll.u32 %v504_v5, 16  ;;  %v552_v21 = vrot.slane %v551_v14, 4  ;;  %v1181_v23 = vsel %vm400_vm0, %v3578_v17, 0  ;;  %v573_v28 = vshrl.u32 %v505_v24, 16  ;;  %v3427_v49 = vld [vmem:[%s4344_s18 + $0x68] sm:$0xf] }
  0x21   : > { %v641_v20 = vpack.c.b16 %v637_v13, %v636_v11  ;;  %v565_v22 = vor.u32 %v564_v16, %v561_v15  ;;  %v576_v29 = vshll.u32 %v505_v24, 16  ;;  %v587_v34 = vshrl.u32 %v507_v26, 16  ;;  %v4138_v50 = vld [vmem:[%s4344_s18 + $0x6c] sm:$0xf0]  ;;  %v3499_v61 = vld [vmem:[%s5363_s2 + $0x8] sm:$0x3] }
  0x22   : > { %v570_v25 = vrot.slane %v568_v19, 5  ;;  %v557_v30 = vsel %vm4359_vm4, %v552_v21, %v556_v18  ;;  %v590_v35 = vshll.u32 %v507_v26, 16  ;;  %v3448_v39 = vor.u32 %v4134_v33, %v3447_v32  ;;  %v3451_v1 = vld [vmem:[%s4344_s18 + $0x30] sm:$0xf]  ;;  %v4135_v2 = vld [vmem:[%s4344_s18 + $0x34] sm:$0xf0] }
  0x23   : > { %3461 = vmatmul.msk.bf16.vlgmr.msra.gmra.mxu3 %vm387_vm1, %v641_v20  ;;  %3434 = vmatmul.msk.bf16.gmra.mxu0 %vm387_vm1, %v3424_v12  ;;  %v566_v27 = vrot.slane %v565_v22, 4  ;;  %v632_v36 = vunpack.c.l.b16 %v557_v30  ;;  %v575_v40 = vrot.slane %v573_v28, 4  ;;  %v578_v41 = vrot.slane %v576_v29, 5  ;;  %v3477_v6 = vld [vmem:[%s4344_s18 + $0xa0] sm:$0xf] }
  0x24   : > { %1190 = vmatpush.bf16.msra.mxu3 %v1181_v23  ;;  %v589_v42 = vrot.slane %v587_v34, 4  ;;  %v592_v43 = vrot.slane %v590_v35, 5  ;;  %v582_v52 = vshll.u32 %v506_v44, 16  ;;  %v596_v54 = vshll.u32 %v508_v45, 16  ;;  %v4141_v7 = vld [vmem:[%s4344_s18 + $0xa4] sm:$0xf0] }
  0x25   : > { %v571_v31 = vsel %vm4359_vm4, %v566_v27, %v570_v25  ;;  %v579_v51 = vor.u32 %v578_v41, %v575_v40  ;;  %v3474_v55 = vor.u32 %v4140_v48, %v3473_v46  ;;  %v3428_v56 = vor.u32 %v4138_v50, %v3427_v49  ;;  %v3431_v8 = vld [vmem:[%s4344_s18 + $0x78] sm:$0xf]  ;;  %v4139_v9 = vld [vmem:[%s4344_s18 + $0x7c] sm:$0xf0]  ;;  %v3520_v11 = vld [vmem:[%s4344_s18 + $0x90] sm:$0xf] }
  0x26   : > { %v633_v38 = vunpack.c.l.b16 %v571_v31  ;;  %v593_v53 = vor.u32 %v592_v43, %v589_v42  ;;  %v584_v58 = vrot.slane %v582_v52, 5  ;;  %v598_v60 = vrot.slane %v596_v54, 5  ;;  %v3522_v12 = vld [vmem:[%s4344_s18 + $0x98] sm:$0xf]  ;;  %v3521_v23 = vld [vmem:[%s4344_s18 + $0x94] sm:$0x1] }
  0x27   : > { %v580_v57 = vrot.slane %v579_v51, 4  ;;  %v821_v62 = vsel %vm400_vm0, %v3499_v61, 0  ;;  %v3452_v5 = vor.u32 %v4135_v2, %v3451_v1  ;;  %v877_v13 = vshrl.u32 %v3520_v11, 16  ;;  %v3523_v24 = vld [vmem:[%s4344_s18 + $0x9c] sm:$0x1] }
  0x28   : > { %v639_v47 = vpack.c.b16 %v633_v38, %v632_v36  ;;  %v594_v59 = vrot.slane %v593_v53, 4  ;;  %830 = vmatpush.bf16.msra.mxu0 %v821_v62  ;;  %v880_v14 = vshll.u32 %v3520_v11, 16  ;;  %v891_v15 = vshrl.u32 %v3522_v12, 16  ;;  %v3549_v25 = vld [vmem:[%s5363_s2 + $0xc] sm:$0x3] }
  0x29   : > { %v585_v63 = vsel %vm4359_vm4, %v580_v57, %v584_v58  ;;  %v894_v16 = vshll.u32 %v3522_v12, 16  ;;  %v3478_v17 = vor.u32 %v4141_v7, %v3477_v6  ;;  %v3432_v18 = vor.u32 %v4139_v9, %v3431_v8  ;;  %v3536_v31 = vld [vmem:[%s5363_s2 + $0xa] sm:$0x3]  ;;  %v3615_v34 = vld [vmem:[%s5363_s2 + $0x10] sm:$0x3] }
  0x2a   : > { %v599_v0 = vsel %vm4359_vm4, %v594_v59, %v598_v60  ;;  %v634_v3 = vunpack.c.l.b16 %v585_v63  ;;  %v879_v19 = vrot.slane %v877_v13, 4  ;;  %v882_v20 = vrot.slane %v880_v14, 5  ;;  %v3552_v44 = vld [vmem:[%s4344_s18 + $0x8] sm:$0xf]  ;;  %v4148_v45 = vld [vmem:[%s4344_s18 + $0xc] sm:$0xf0] }
  0x2b   : > { %3455 = vmatmul.msk.bf16.gmra.mxu1 %vm387_vm1, %v3448_v39  ;;  %v635_v4 = vunpack.c.l.b16 %v599_v0  ;;  %v893_v21 = vrot.slane %v891_v15, 4  ;;  %v896_v22 = vrot.slane %v894_v16, 5  ;;  %v886_v27 = vshll.u32 %v3521_v23, 16  ;;  %v3481_v46 = vld [vmem:[%s4344_s18 + $0xb0] sm:$0xf] }
  0x2c   : > { %v883_v26 = vor.u32 %v882_v20, %v879_v19  ;;  %v900_v29 = vshll.u32 %v3523_v24, 16  ;;  %v1098_v30 = vsel %vm400_vm0, %v3549_v25, 0  ;;  %v1015_v32 = vsel %vm400_vm0, %v3536_v31, 0  ;;  %v4142_v48 = vld [vmem:[%s4344_s18 + $0xb4] sm:$0xf0] }
  0x2d   : > { %v640_v10 = vpack.c.b16 %v635_v4, %v634_v3  ;;  %v897_v28 = vor.u32 %v896_v22, %v893_v21  ;;  %1107 = vmatpush.bf16.msrb.mxu2 %v1098_v30  ;;  %1024 = vmatpush.bf16.msrb.mxu1 %v1015_v32  ;;  %v888_v35 = vrot.slane %v886_v27, 5  ;;  %v1375_v39 = vsel %vm400_vm0, %v3615_v34, 0  ;;  %v3439_v49 = vld [vmem:[%s4344_s18] sm:$0xf]  ;;  %v4132_v50 = vld [vmem:[%s4344_s18 + $0x4] sm:$0xf0] }
  0x2e   : > { %v884_v33 = vrot.slane %v883_v26, 4  ;;  %v902_v38 = vrot.slane %v900_v29, 5  ;;  %v3553_v51 = vor.u32 %v4148_v45, %v3552_v44  ;;  %v3524_v52 = vld [vmem:[%s4344_s18 + $0xa0] sm:$0xf]  ;;  %v3526_v53 = vld [vmem:[%s4344_s18 + $0xa8] sm:$0xf]  ;;  %v3482_v58 = vor.u32 %v4142_v48, %v3481_v46 }
  0x2f   : > { %v898_v36 = vrot.slane %v897_v28, 4  ;;  %v905_v54 = vshrl.u32 %v3524_v52, 16  ;;  %v922_v57 = vshll.u32 %v3526_v53, 16  ;;  %v3440_v59 = vor.u32 %v4132_v50, %v3439_v49  ;;  %v3525_v0 = vld [vmem:[%s4344_s18 + $0xa4] sm:$0x1] }
  0x30   : > { %3459 = vmatmul.msk.bf16.gmra.mxu2 %vm387_vm1, %v639_v47  ;;  %v889_v40 = vsel %vm4359_vm4, %v884_v33, %v888_v35  ;;  %v3527_v1 = vld [vmem:[%s4344_s18 + $0xac] sm:$0x1]  ;;  %v914_v3 = vshll.u32 %v3525_v0, 16  ;;  %v3556_v14 = vld [vmem:[%s4344_s18 + $0x18] sm:$0xf] }
  0x31   : > { %v903_v41 = vsel %vm4359_vm4, %v898_v36, %v902_v38  ;;  %v990_v42 = vunpack.c.l.b16 %v889_v40  ;;  %v907_v60 = vrot.slane %v905_v54, 4  ;;  %v924_v63 = vrot.slane %v922_v57, 5  ;;  %v4149_v15 = vld [vmem:[%s4344_s18 + $0x1c] sm:$0xf0]  ;;  %v3502_v19 = vld [vmem:[%s4344_s18 + $0xd8] sm:$0xf] }
  0x32   : > { %v991_v43 = vunpack.c.l.b16 %v903_v41  ;;  %v916_v7 = vrot.slane %v914_v3, 5  ;;  %v3485_v16 = vld [vmem:[%s4344_s18 + $0xc0] sm:$0xf]  ;;  %v3557_v21 = vor.u32 %v4149_v15, %v3556_v14  ;;  %v3528_v22 = vld [vmem:[%s4344_s18 + $0xb0] sm:$0xf] }
  0x33   : > { %3487 = vmatmul.msk.bf16.vlgmr.msrb.gmra.mxu3 %vm387_vm1, %v3474_v55  ;;  %3435 = vmatmul.msk.bf16.gmra.mxu0 %vm387_vm1, %v3428_v56  ;;  %v908_v55 = vshll.u32 %v3524_v52, 16  ;;  %v919_v56 = vshrl.u32 %v3526_v53, 16  ;;  %v4144_v20 = vld [vmem:[%s4344_s18 + $0xdc] sm:$0xf0]  ;;  %v3530_v23 = vld [vmem:[%s4344_s18 + $0xb8] sm:$0xf] }
  0x34   : > { %4246 = vmatpush.bf16.msrb.mxu3 %v1375_v39  ;;  %v998_v47 = vpack.c.b16 %v991_v43, %v990_v42  ;;  %v933_v24 = vshrl.u32 %v3528_v22, 16  ;;  %v936_v25 = vshll.u32 %v3528_v22, 16  ;;  %v947_v26 = vshrl.u32 %v3530_v23, 16  ;;  %v3529_v34 = vld [vmem:[%s4344_s18 + $0xb4] sm:$0x1] }
  0x35   : > { %v910_v61 = vrot.slane %v908_v55, 5  ;;  %v921_v62 = vrot.slane %v919_v56, 4  ;;  %v950_v27 = vshll.u32 %v3530_v23, 16  ;;  %v3503_v29 = vor.u32 %v4144_v20, %v3502_v19  ;;  %v3531_v35 = vld [vmem:[%s4344_s18 + $0xbc] sm:$0x1] }
  0x36   : > { %v935_v30 = vrot.slane %v933_v24, 4  ;;  %v938_v31 = vrot.slane %v936_v25, 5  ;;  %v949_v32 = vrot.slane %v947_v26, 4  ;;  %v942_v38 = vshll.u32 %v3529_v34, 16  ;;  %v3560_v49 = vld [vmem:[%s4344_s18 + $0x28] sm:$0xf] }
  0x37   : > { %v911_v2 = vor.u32 %v910_v61, %v907_v60  ;;  %v925_v4 = vor.u32 %v924_v63, %v921_v62  ;;  %v952_v33 = vrot.slane %v950_v27, 5  ;;  %v956_v40 = vshll.u32 %v3531_v35, 16  ;;  %v4150_v50 = vld [vmem:[%s4344_s18 + $0x2c] sm:$0xf0]  ;;  %v4152_v53 = vld [vmem:[%s4344_s18 + $0x54] sm:$0xf0] }
  0x38   : > { %v939_v36 = vor.u32 %v938_v31, %v935_v30  ;;  %v944_v42 = vrot.slane %v942_v38, 5  ;;  %v3506_v54 = vld [vmem:[%s4344_s18 + $0xe8] sm:$0xf]  ;;  %v4145_v55 = vld [vmem:[%s4344_s18 + $0xec] sm:$0xf0]  ;;  %v3561_v56 = vor.u32 %v4150_v50, %v3560_v49 }
  0x39   : > { %v912_v6 = vrot.slane %v911_v2, 4  ;;  %v926_v8 = vrot.slane %v925_v4, 4  ;;  %v958_v44 = vrot.slane %v956_v40, 5  ;;  %v3532_v57 = vld [vmem:[%s4344_s18 + $0xc0] sm:$0xf]  ;;  %v3507_v0 = vor.u32 %v4145_v55, %v3506_v54 }
  0x3a   : > { %v940_v41 = vrot.slane %v939_v36, 4  ;;  %v964_v60 = vshll.u32 %v3532_v57, 16  ;;  %v3564_v19 = vld [vmem:[%s4344_s18 + $0x38] sm:$0xf]  ;;  %v4151_v20 = vld [vmem:[%s4344_s18 + $0x3c] sm:$0xf0] }
  0x3b   : > { %3456 = vmatmul.msk.bf16.gmra.mxu1 %vm387_vm1, %v3452_v5  ;;  %v928_v5 = vshll.u32 %v3527_v1, 16  ;;  %v3585_v22 = vld [vmem:[%s4344_s18 + $0x60] sm:$0xf]  ;;  %v4153_v23 = vld [vmem:[%s4344_s18 + $0x64] sm:$0xf0]  ;;  %v3565_v26 = vor.u32 %v4151_v20, %v3564_v19 }
  0x3c   : > { %v945_v45 = vsel %vm4359_vm4, %v940_v41, %v944_v42  ;;  %v966_v2 = vrot.slane %v964_v60, 5  ;;  %v3510_v24 = vld [vmem:[%s4344_s18 + $0xf8] sm:$0xf]  ;;  %v4146_v25 = vld [vmem:[%s4344_s18 + $0xfc] sm:$0xf0]  ;;  %v3586_v27 = vor.u32 %v4153_v23, %v3585_v22 }
  0x3d   : > { %v930_v9 = vrot.slane %v928_v5, 5  ;;  %v3533_v5 = vld [vmem:[%s4344_s18 + $0xc4] sm:$0x1]  ;;  %v3601_v30 = vld [vmem:[%s4344_s18 + $0x10] sm:$0xf] }
  0x3e   : > { %v1254_v34 = vshll.u32 %v3601_v30, 16  ;;  %v3600_v40 = vld [vmem:[%s4344_s18 + $0xc] sm:$0x1]  ;;  %v3602_v41 = vld [vmem:[%s4344_s18 + $0x14] sm:$0x1] }
  0x3f   : > { %v931_v11 = vsel %vm4359_vm4, %v926_v8, %v930_v9  ;;  %v970_v8 = vshll.u32 %v3533_v5, 16  ;;  %v3589_v42 = vld [vmem:[%s4344_s18 + $0x70] sm:$0xf]  ;;  %v1260_v49 = vshll.u32 %v3602_v41, 16  ;;  %v3605_v60 = vld [vmem:[%s4344_s18 + $0x20] sm:$0xf] }
  0x40   : > { %3460 = vmatmul.msk.bf16.gmra.mxu2 %vm387_vm1, %v640_v10  ;;  %v917_v10 = vsel %vm4359_vm4, %v912_v6, %v916_v7  ;;  %v993_v13 = vunpack.c.l.b16 %v931_v11  ;;  %v3535_v6 = vld [vmem:[%s4344_s18 + $0xcc] sm:$0x1]  ;;  %v1279_v5 = vshrl.u32 %v3605_v60, 16  ;;  %v3604_v23 = vld [vmem:[%s4344_s18 + $0x1c] sm:$0x1] }
  0x41   : > { %v992_v12 = vunpack.c.l.b16 %v917_v10  ;;  %v984_v10 = vshll.u32 %v3535_v6, 16  ;;  %v1282_v6 = vshll.u32 %v3605_v60, 16 }
  0x43   : > { %3488 = vmatmul.msk.bf16.gmra.mxu3 %vm387_vm1, %v3478_v17  ;;  %3436 = vmatmul.msk.bf16.gmra.mxu0 %vm387_vm1, %v3432_v18  ;;  %v999_v17 = vpack.c.b16 %v993_v13, %v992_v12  ;;  %v4143_v18 = vld [vmem:[%s4344_s18 + $0xc4] sm:$0xf0]  ;;  %v972_v12 = vrot.slane %v970_v8, 5  ;;  %v986_v14 = vrot.slane %v984_v10, 5  ;;  %v3593_v8 = vld [vmem:[%s4344_s18 + $0x80] sm:$0xf] }
  0x44   : > { %v3486_v28 = vor.u32 %v4143_v18, %v3485_v16  ;;  %v1284_v22 = vrot.slane %v1282_v6, 5  ;;  %v3612_v6 = vld [vmem:[%s4344_s18 + $0x3c] sm:$0x1] }
  0x4b   : > { %3537 = vmatmul.msk.bf16.vlgmr.msrb.gmra.mxu1 %vm387_vm1, %v998_v47  ;;  %v994_v47 = vunpack.c.l.b16 %v945_v45  ;;  %v4147_v45 = vld [vmem:[%s4344_s18 + $0x10c] sm:$0xf0] }
  0x50   : > { %3566 = vmatmul.msk.bf16.vlgmr.msrb.gmra.mxu2 %vm387_vm1, %v3553_v51  ;;  %v3581_v51 = vld [vmem:[%s4344_s18 + $0x50] sm:$0xf] }
  0x51   : > { %v3582_v63 = vor.u32 %v4152_v53, %v3581_v51 }
  0x53   : > { %3489 = vmatmul.msk.bf16.gmra.mxu3 %vm387_vm1, %v3482_v58  ;;  %3453 = vmatmul.msk.bf16.vlgmr.msrb.gmra.mxu0 %vm387_vm1, %v3440_v59  ;;  %v3534_v58 = vld [vmem:[%s4344_s18 + $0xc8] sm:$0xf]  ;;  %v961_v59 = vshrl.u32 %v3532_v57, 16 }
  0x54   : > { %1384 = vmatpush.bf16.msrb.mxu0 %v1375_v39  ;;  %v953_v39 = vor.u32 %v952_v33, %v949_v32  ;;  %v975_v61 = vshrl.u32 %v3534_v58, 16  ;;  %v978_v62 = vshll.u32 %v3534_v58, 16  ;;  %v1251_v33 = vshrl.u32 %v3601_v30, 16  ;;  %v3607_v57 = vld [vmem:[%s4344_s18 + $0x28] sm:$0xf] }
  0x55   : > { %v963_v1 = vrot.slane %v961_v59, 4  ;;  %v3609_v58 = vld [vmem:[%s4344_s18 + $0x30] sm:$0xf]  ;;  %v3603_v59 = vld [vmem:[%s4344_s18 + $0x18] sm:$0xf] }
  0x56   : > { %v954_v43 = vrot.slane %v953_v39, 4  ;;  %v977_v3 = vrot.slane %v975_v61, 4  ;;  %v980_v4 = vrot.slane %v978_v62, 5  ;;  %v1253_v38 = vrot.slane %v1251_v33, 4 }
  0x57   : > { %v967_v7 = vor.u32 %v966_v2, %v963_v1  ;;  %v1256_v39 = vrot.slane %v1254_v34, 5  ;;  %v1307_v1 = vshrl.u32 %v3609_v58, 16  ;;  %v1310_v2 = vshll.u32 %v3609_v58, 16 }
  0x58   : > { %v959_v46 = vsel %vm4359_vm4, %v954_v43, %v958_v44  ;;  %v981_v9 = vor.u32 %v980_v4, %v977_v3  ;;  %v4154_v43 = vld [vmem:[%s4344_s18 + $0x74] sm:$0xf0]  ;;  %v3514_v44 = vld [vmem:[%s4344_s18 + $0x108] sm:$0xf]  ;;  %v1265_v3 = vshrl.u32 %v3603_v59, 16  ;;  %v1268_v4 = vshll.u32 %v3603_v59, 16 }
  0x59   : > { %v995_v48 = vunpack.c.l.b16 %v959_v46  ;;  %v968_v11 = vrot.slane %v967_v7, 4  ;;  %v3590_v50 = vor.u32 %v4154_v43, %v3589_v42  ;;  %v3515_v51 = vor.u32 %v4147_v45, %v3514_v44 }
  0x5a   : > { %v982_v13 = vrot.slane %v981_v9, 4  ;;  %v4155_v9 = vld [vmem:[%s4344_s18 + $0x84] sm:$0xf0]  ;;  %v1267_v19 = vrot.slane %v1265_v3, 4  ;;  %v1270_v20 = vrot.slane %v1268_v4, 5 }
  0x5b   : > { %3538 = vmatmul.msk.bf16.gmra.mxu1 %vm387_vm1, %v999_v17  ;;  %v1000_v52 = vpack.c.b16 %v995_v48, %v994_v47  ;;  %v973_v15 = vsel %vm4359_vm4, %v968_v11, %v972_v12  ;;  %v1246_v47 = vshll.u32 %v3600_v40, 16  ;;  %v1257_v48 = vor.u32 %v1256_v39, %v1253_v38 }
  0x5c   : > { %v987_v16 = vsel %vm4359_vm4, %v982_v13, %v986_v14  ;;  %v996_v17 = vunpack.c.l.b16 %v973_v15  ;;  %v3608_v13 = vld [vmem:[%s4344_s18 + $0x2c] sm:$0x1] }
  0x5d   : > { %v997_v18 = vunpack.c.l.b16 %v987_v16  ;;  %v1248_v54 = vrot.slane %v1246_v47, 5  ;;  %v1258_v55 = vrot.slane %v1257_v48, 4  ;;  %v1309_v16 = vrot.slane %v1307_v1, 4  ;;  %v3611_v47 = vld [vmem:[%s4344_s18 + $0x38] sm:$0xf] }
  0x5e   : > { %v3613_v48 = vld [vmem:[%s4344_s18 + $0x40] sm:$0xf] }
  0x5f   : > { %v1335_v58 = vshrl.u32 %v3613_v48, 16  ;;  %v1338_v59 = vshll.u32 %v3613_v48, 16 }
  0x60   : > { %3567 = vmatmul.msk.bf16.gmra.mxu2 %vm387_vm1, %v3557_v21  ;;  %v1001_v21 = vpack.c.b16 %v997_v18, %v996_v17  ;;  %v1312_v17 = vrot.slane %v1310_v2, 5  ;;  %v3610_v18 = vld [vmem:[%s4344_s18 + $0x34] sm:$0x1] }
  0x61   : > { %v1316_v30 = vshll.u32 %v3610_v18, 16  ;;  %v1337_v4 = vrot.slane %v1335_v58, 4 }
  0x63   : > { %3490 = vmatmul.msk.bf16.gmra.mxu3 %vm387_vm1, %v3486_v28  ;;  %3516 = vmatmul.msk.bf16.vlgmr.msra.gmra.mxu0 %vm387_vm1, %v3503_v29  ;;  %v3511_v28 = vor.u32 %v4146_v25, %v3510_v24  ;;  %v3599_v29 = vld [vmem:[%s4344_s18 + $0x8] sm:$0xf]  ;;  %v3606_v24 = vld [vmem:[%s4344_s18 + $0x24] sm:$0x1]  ;;  %v3594_v25 = vor.u32 %v4155_v9, %v3593_v8  ;;  %v1318_v42 = vrot.slane %v1316_v30, 5 }
  0x64   : > { %v1237_v31 = vshrl.u32 %v3599_v29, 16  ;;  %v1240_v32 = vshll.u32 %v3599_v29, 16  ;;  %v1313_v29 = vor.u32 %v1312_v17, %v1309_v16  ;;  %v1288_v34 = vshll.u32 %v3606_v24, 16  ;;  %v3614_v8 = vld [vmem:[%s4344_s18 + $0x44] sm:$0x1] }
  0x65   : > { %v1344_v16 = vshll.u32 %v3614_v8, 16 }
  0x66   : > { %v1239_v35 = vrot.slane %v1237_v31, 4  ;;  %v1242_v36 = vrot.slane %v1240_v32, 5  ;;  %v1271_v31 = vor.u32 %v1270_v20, %v1267_v19  ;;  %v1274_v32 = vshll.u32 %v3604_v23, 16 }
  0x67   : > { %v1314_v41 = vrot.slane %v1313_v29, 4 }
  0x68   : > { %v1243_v46 = vor.u32 %v1242_v36, %v1239_v35  ;;  %v1272_v43 = vrot.slane %v1271_v31, 4  ;;  %v1276_v44 = vrot.slane %v1274_v32, 5 }
  0x6a   : > { %v1244_v53 = vrot.slane %v1243_v46, 4  ;;  %v1290_v46 = vrot.slane %v1288_v34, 5 }
  0x6b   : > { %3539 = vmatmul.msk.bf16.gmra.mxu1 %vm387_vm1, %v1000_v52 }
  0x6c   : > { %v1249_v61 = vsel %vm4359_vm4, %v1244_v53, %v1248_v54  ;;  %v1277_v53 = vsel %vm4359_vm4, %v1272_v43, %v1276_v44 }
  0x6d   : > { %v1350_v11 = vunpack.c.l.b16 %v1249_v61 }
  0x70   : > { %3568 = vmatmul.msk.bf16.gmra.mxu2 %vm387_vm1, %v3561_v56  ;;  %v1262_v56 = vrot.slane %v1260_v49, 5 }
  0x72   : > { %v1263_v62 = vsel %vm4359_vm4, %v1258_v55, %v1262_v56  ;;  %v1321_v56 = vshrl.u32 %v3611_v47, 16 }
  0x73   : > { %3595 = vmatmul.msk.bf16.vlgmr.msra.gmra.mxu3 %vm387_vm1, %v3582_v63  ;;  %3517 = vmatmul.msk.bf16.gmra.mxu0 %vm387_vm1, %v3507_v0  ;;  %v1293_v63 = vshrl.u32 %v3607_v57, 16  ;;  %v1296_v0 = vshll.u32 %v3607_v57, 16  ;;  %v1351_v12 = vunpack.c.l.b16 %v1263_v62  ;;  %v1324_v57 = vshll.u32 %v3611_v47, 16 }
  0x74   : > { %v1323_v2 = vrot.slane %v1321_v56, 4 }
  0x75   : > { %v1295_v14 = vrot.slane %v1293_v63, 4  ;;  %v1298_v15 = vrot.slane %v1296_v0, 5  ;;  %v1352_v0 = vunpack.c.l.b16 %v1277_v53  ;;  %v1326_v3 = vrot.slane %v1324_v57, 5 }
  0x7b   : > { %3540 = vmatmul.msk.bf16.gmra.mxu1 %vm387_vm1, %v1001_v21  ;;  %v1281_v21 = vrot.slane %v1279_v5, 4  ;;  %v1340_v5 = vrot.slane %v1338_v59, 5 }
  0x7d   : > { %v1285_v33 = vor.u32 %v1284_v22, %v1281_v21  ;;  %v1346_v22 = vrot.slane %v1344_v16, 5  ;;  %v4172_v16 = vld [vmem:[%s5365_s4 + $0x60] sm:$0xff] }
  0x7f   : > { %v1286_v45 = vrot.slane %v1285_v33, 4 }
  0x80   : > { %3569 = vmatmul.msk.bf16.gmra.mxu2 %vm387_vm1, %v3565_v26  ;;  %v1358_v26 = vpack.c.b16 %v1351_v12, %v1350_v11 }
  0x81   : > { %v1291_v54 = vsel %vm4359_vm4, %v1286_v45, %v1290_v46 }
  0x82   : > { %v1353_v1 = vunpack.c.l.b16 %v1291_v54 }
  0x83   : > { %3596 = vmatmul.msk.bf16.gmra.mxu3 %vm387_vm1, %v3586_v27  ;;  %3518 = vmatmul.msk.bf16.gmra.mxu0 %vm387_vm1, %v3511_v28  ;;  %v1299_v27 = vor.u32 %v1298_v15, %v1295_v14  ;;  %v1302_v28 = vshll.u32 %v3608_v13, 16  ;;  %v1327_v13 = vor.u32 %v1326_v3, %v1323_v2  ;;  %v1330_v14 = vshll.u32 %v3612_v6, 16  ;;  %v4166_v2 = vld [vmem:[%s5365_s4 + $0x30] sm:$0xff] }
  0x84   : > { %v1359_v11 = vpack.c.b16 %v1353_v1, %v1352_v0  ;;  %v1341_v15 = vor.u32 %v1340_v5, %v1337_v4  ;;  %v4174_v3 = vld [vmem:[%s5365_s4 + $0x70] sm:$0xff] }
  0x85   : > { %v1300_v39 = vrot.slane %v1299_v27, 4  ;;  %v1304_v40 = vrot.slane %v1302_v28, 5  ;;  %v1328_v19 = vrot.slane %v1327_v13, 4  ;;  %v1332_v20 = vrot.slane %v1330_v14, 5 }
  0x86   : > { %v1342_v21 = vrot.slane %v1341_v15, 4  ;;  %v4164_v15 = vld [vmem:[%s5365_s4 + $0x20] sm:$0xff] }
  0x90   : > { %v4515_v52 = vpop.f32.mrf.mxu0 }
  0x93   : > { %3597 = vmatmul.msk.bf16.gmra.mxu3 %vm387_vm1, %v3590_v50  ;;  %3519 = vmatmul.msk.bf16.gmra.mxu0 %vm387_vm1, %v3515_v51  ;;  %v1305_v50 = vsel %vm4359_vm4, %v1300_v39, %v1304_v40  ;;  %v1319_v51 = vsel %vm4359_vm4, %v1314_v41, %v1318_v42 }
  0x94   : > { %v1354_v62 = vunpack.c.l.b16 %v1305_v50  ;;  %v1355_v63 = vunpack.c.l.b16 %v1319_v51 }
  0x98   : > { %v4527_v7 = vpop.f32.mrf.mxu0  ;;  %v482_v10 = vpop.f32.mrf.mxu1 }
  0xa0   : > { %v418_v35 = vpop.f32.mrf.mxu0  ;;  %v4537_v38 = vpop.f32.mrf.mxu1 }
  0xa1   : > { %v4535_v36 = vadd.f32 %v482_v10, %v418_v35  ;;  %v1360_v10 = vpack.c.b16 %v1355_v63, %v1354_v62 }
  0xa3   : > { %3598 = vmatmul.msk.bf16.gmra.mxu3 %vm387_vm1, %v3594_v25  ;;  %3616 = vmatmul.msk.bf16.vlgmr.msrb.gmra.mxu0 %vm387_vm1, %v1358_v26  ;;  %v666_v60 = vpop.f32.mrf.mxu2  ;;  %v1333_v25 = vsel %vm4359_vm4, %v1328_v19, %v1332_v20  ;;  %v1347_v26 = vsel %vm4359_vm4, %v1342_v21, %v1346_v22  ;;  %v4268_v21 = vmov 0   ;;  %v4183_v22 = vld [vmem:[%s5365_s4 + $0xb8] sm:$0xff] }
  0xa4   : > { %v1356_v27 = vunpack.c.l.b16 %v1333_v25  ;;  %v1357_v28 = vunpack.c.l.b16 %v1347_v26  ;;  %329 = vst [vmem:[#allocation2 + $0x8] sm:$0xf] %v4268_v21  ;;  %2072 = vmatpush.bf16.msra.mxu3 %v4183_v22  ;;  %v4195_v26 = vld [vmem:[%s5365_s4 + $0xf8] sm:$0xff] }
  0xa5   : > { %330 = vst [vmem:[#allocation2 + $0xc] sm:$0x1] %v4268_v21  ;;  %2206 = vmatpush.bf16.msra.mxu0 %v4195_v26 }
  0xa6   : > { %v681_v49 = vpop.f32.mrf.mxu3  ;;  %v1361_v32 = vpack.c.b16 %v1357_v28, %v1356_v27  ;;  %327 = vst [vmem:[#allocation2] sm:$0xf] %v4268_v21  ;;  %v4182_v27 = vld [vmem:[%s5365_s4 + $0xb0] sm:$0xff] }
  0xa7   : > { %328 = vst [vmem:[#allocation2 + $0x4] sm:$0x1] %v4268_v21 }
  0xa8   : > { %v4551_v55 = vpop.f32.mrf.mxu0  ;;  %v487_v61 = vpop.f32.mrf.mxu1  ;;  %331 = vst [vmem:[#allocation2 + $0x10] sm:$0xf] %v4268_v21  ;;  %2073 = vmatpush.bf16.msra.mxu3 %v4182_v27  ;;  %v4742_v27 = vld [vmem:[%s5364_s3] ss:$0 sm:$0xff] }
  0xa9   : > { %332 = vst [vmem:[#allocation2 + $0x14] sm:$0x1] %v4268_v21 }
  0xaa   : > { %333 = vst [vmem:[#allocation2 + $0x18] sm:$0xf] %v4268_v21 }
  0xab   : > { %v4557_v17 = vpop.f32.mrf.mxu2  ;;  %334 = vst [vmem:[#allocation2 + $0x1c] sm:$0x1] %v4268_v21 }
  0xac   : > { %335 = vst [vmem:[#allocation2 + $0x20] sm:$0xf] %v4268_v21 }
  0xad   : > { %336 = vst [vmem:[#allocation2 + $0x24] sm:$0x1] %v4268_v21 }
  0xae   : > { %v4555_v9 = vpop.f32.mrf.mxu3  ;;  %337 = vst [vmem:[#allocation2 + $0x28] sm:$0xf] %v4268_v21 }
  0xaf   : > { %338 = vst [vmem:[#allocation2 + $0x2c] sm:$0x1] %v4268_v21 }
  0xb0   : > { %v423_v12 = vpop.f32.mrf.mxu0  ;;  %v4561_v18 = vpop.f32.mrf.mxu1  ;;  %339 = vst [vmem:[#allocation2 + $0x30] sm:$0xf] %v4268_v21 }
  0xb1   : > { %v488_v48 = vadd.f32 %v487_v61, %v423_v12  ;;  %340 = vst [vmem:[#allocation2 + $0x34] sm:$0x1] %v4268_v21 }
  0xb2   : > { %341 = vst [vmem:[#allocation2 + $0x38] sm:$0xf] %v4268_v21 }
  0xb3   : > { %3618 = vmatmul.msk.bf16.vlgmr.msrb.gmra.mxu3 %vm387_vm1, %v1360_v10  ;;  %3617 = vmatmul.msk.bf16.gmra.mxu0 %vm387_vm1, %v1359_v11  ;;  %v671_v29 = vpop.f32.mrf.mxu2  ;;  %v4165_v10 = vld [vmem:[%s5365_s4 + $0x28] sm:$0xff]  ;;  %342 = vst [vmem:[#allocation2 + $0x3c] sm:$0x1] %v4268_v21 }
  0xb4   : > { %v688_v39 = vadd.f32 %v671_v29, %v4535_v36  ;;  %v4173_v11 = vld [vmem:[%s5365_s4 + $0x68] sm:$0xff]  ;;  %343 = vst [vmem:[#allocation2 + $0x40] sm:$0xf] %v4268_v21 }
  0xb5   : > { %344 = vst [vmem:[#allocation2 + $0x44] sm:$0x1] %v4268_v21 }
  0xb6   : > { %v749_v23 = vpop.f32.mrf.mxu3  ;;  %345 = vst [vmem:[#allocation2 + $0x48] sm:$0xf] %v4268_v21 }
  0xb7   : > { %346 = vst [vmem:[#allocation2 + $0x4c] sm:$0x1] %v4268_v21 }
  0xb8   : > { %v4563_v24 = vpop.f32.mrf.mxu0  ;;  %v492_v31 = vpop.f32.mrf.mxu1 }
  0xbb   : > { %v4575_v42 = vpop.f32.mrf.mxu2 }
  0xbe   : > { %v4569_v30 = vpop.f32.mrf.mxu3 }
  0xc0   : > { %v428_v33 = vpop.f32.mrf.mxu0  ;;  %v4592_v58 = vpop.f32.mrf.mxu1 }
  0xc1   : > { %v493_v34 = vadd.f32 %v492_v31, %v428_v33  ;;  %v4194_v31 = vld [vmem:[%s5365_s4 + $0xf0] sm:$0xff] }
  0xc2   : > { %2207 = vmatpush.bf16.msra.mxu0 %v4194_v31 }
  0xc3   : > { %3619 = vmatmul.msk.bf16.gmra.mxu3 %vm387_vm1, %v1361_v32  ;;  %v692_v35 = vadd.f32 %v681_v49, %v493_v34  ;;  %v676_v47 = vpop.f32.mrf.mxu2  ;;  %v4181_v32 = vld [vmem:[%s5365_s4 + $0xa8] sm:$0xff] }
  0xc4   : > { %v690_v51 = vadd.f32 %v676_v47, %v488_v48  ;;  %2074 = vmatpush.bf16.msra.mxu3 %v4181_v32  ;;  %v4162_v47 = vld [vmem:[%s5365_s4 + $0x10] sm:$0xff]  ;;  %v4192_v48 = vld [vmem:[%s5365_s4 + $0xe0] sm:$0xff] }
  0xc6   : > { %v754_v40 = vpop.f32.mrf.mxu3 }
  0xc7   : > { %v4573_v41 = vadd.f32 %v754_v40, %v688_v39  ;;  %v4193_v39 = vld [vmem:[%s5365_s4 + $0xe8] sm:$0xff]  ;;  %v4180_v40 = vld [vmem:[%s5365_s4 + $0xa0] sm:$0xff] }
  0xc8   : > { %v4577_v43 = vpop.f32.mrf.mxu0  ;;  %v4606_v0 = vpop.f32.mrf.mxu1  ;;  %2208 = vmatpush.bf16.msra.mxu0 %v4193_v39  ;;  %2075 = vmatpush.bf16.msra.mxu3 %v4180_v40  ;;  %v485_v40 = vadd.f32 %v4537_v38, %v4551_v55 }
  0xc9   : > { %v495_v55 = vadd.f32 %v4592_v58, %v4577_v43 }
  0xcb   : > { %v4602_v61 = vpop.f32.mrf.mxu2 }
  0xcc   : > { %2209 = vmatpush.bf16.msra.mxu0 %v4192_v48  ;;  %v689_v48 = vadd.f32 %v4575_v42, %v485_v40  ;;  %v4168_v42 = vld [vmem:[%s5365_s4 + $0x40] sm:$0xff] }
  0xce   : > { %v4579_v44 = vpop.f32.mrf.mxu3 }
  0xd0   : > { %v477_v45 = vpop.f32.mrf.mxu0  ;;  %v4620_v6 = vpop.f32.mrf.mxu1 }
  0xd1   : > { %v478_v46 = vadd.f32 %v477_v45, %v4515_v52  ;;  %v4167_v52 = vld [vmem:[%s5365_s4 + $0x38] sm:$0xff] }
  0xd2   : > { %1903 = vmatpush.bf16.msra.mxu2 %v4167_v52 }
  0xd3   : > { %v686_v50 = vadd.f32 %v666_v60, %v478_v46  ;;  %v4175_v60 = vld [vmem:[%s5365_s4 + $0x78] sm:$0xff]  ;;  %v4616_v4 = vpop.f32.mrf.mxu2 }
  0xd4   : > { %1802 = vmatpush.bf16.msra.mxu1 %v4175_v60  ;;  %v4171_v46 = vld [vmem:[%s5365_s4 + $0x58] sm:$0xff] }
  0xd5   : > { %v4582_v53 = vadd.f32 %v749_v23, %v686_v50  ;;  %v4191_v60 = vld [vmem:[%s5365_s4 + $0xd8] sm:$0xff] }
  0xd6   : > { %v759_v49 = vpop.f32.mrf.mxu3  ;;  %1904 = vmatpush.bf16.msra.mxu2 %v4166_v2  ;;  %2210 = vmatpush.bf16.msra.mxu0 %v4191_v60 }
  0xd7   : > { %v4584_v36 = vadd.f32 %v759_v49, %v690_v51  ;;  %v4179_v51 = vld [vmem:[%s5365_s4 + $0x98] sm:$0xff] }
  0xd8   : > { %v4586_v54 = vpop.f32.mrf.mxu0  ;;  %1803 = vmatpush.bf16.msra.mxu1 %v4174_v3  ;;  %v4642_v19 = vpop.f32.mrf.mxu1  ;;  %2076 = vmatpush.bf16.msra.mxu3 %v4179_v51 }
  0xd9   : > { %v480_v50 = vadd.f32 %v4586_v54, %v4527_v7  ;;  %v4161_v54 = vld [vmem:[%s5365_s4 + $0x8] sm:$0xff] }
  0xda   : > { %1905 = vmatpush.bf16.msra.mxu2 %v4165_v10 }
  0xdb   : > { %v4632_v13 = vpop.f32.mrf.mxu2  ;;  %v687_v7 = vadd.f32 %v4557_v17, %v480_v50  ;;  %v4170_v17 = vld [vmem:[%s5365_s4 + $0x50] sm:$0xff] }
  0xdc   : > { %1804 = vmatpush.bf16.msra.mxu1 %v4173_v11  ;;  %v4160_v11 = vld [vmem:[%s5365_s4] sm:$0xff] }
  0xdd   : > { %v770_v10 = vadd.f32 %v4569_v30, %v687_v7 }
  0xde   : > { %v4588_v56 = vpop.f32.mrf.mxu3  ;;  %1906 = vmatpush.bf16.msra.mxu2 %v4164_v15  ;;  %v4190_v15 = vld [vmem:[%s5365_s4 + $0xd0] sm:$0xff] }
  0xdf   : > { %2211 = vmatpush.bf16.msra.mxu0 %v4190_v15 }
  0xe0   : > { %v4590_v57 = vpop.f32.mrf.mxu0  ;;  %1805 = vmatpush.bf16.msra.mxu1 %v4172_v16  ;;  %v4661_v29 = vpop.f32.mrf.mxu1 }
  0xe3   : > { %v4649_v23 = vpop.f32.mrf.mxu2 }
  0xe4   : > { %1806 = vmatpush.bf16.msra.mxu1 %v4171_v46 }
  0xe6   : > { %v764_v59 = vpop.f32.mrf.mxu3 }
  0xe7   : > { %v4594_v62 = vadd.f32 %v764_v59, %v692_v35  ;;  %v4163_v35 = vld [vmem:[%s5365_s4 + $0x18] sm:$0xff]  ;;  %v852_v59 = vadd.f32 %v4590_v57, %v4582_v53  ;;  %v4178_v53 = vld [vmem:[%s5365_s4 + $0x90] sm:$0xff] }
  0xe8   : > { %v4604_v63 = vpop.f32.mrf.mxu0  ;;  %1907 = vmatpush.bf16.msra.mxu2 %v4163_v35  ;;  %v4698_v49 = vpop.f32.mrf.mxu1  ;;  %2077 = vmatpush.bf16.msra.mxu3 %v4178_v53  ;;  %v4176_v35 = vld [vmem:[%s5365_s4 + $0x80] sm:$0xff] }
  0xe9   : > { %v1046_v57 = vadd.f32 %v4606_v0, %v852_v59  ;;  %1807 = vmatpush.bf16.msra.mxu1 %v4170_v17  ;;  %v4177_v0 = vld [vmem:[%s5365_s4 + $0x88] sm:$0xff]  ;;  %v853_v21 = vadd.f32 %v4604_v63, %v770_v10  ;;  %v490_v59 = vadd.f32 %v4561_v18, %v4563_v24 }
  0xeb   : > { %v4669_v33 = vpop.f32.mrf.mxu2  ;;  %v1129_v16 = vadd.f32 %v4616_v4, %v1046_v57  ;;  %v4189_v4 = vld [vmem:[%s5365_s4 + $0xc8] sm:$0xff]  ;;  %v1047_v63 = vadd.f32 %v4620_v6, %v853_v21  ;;  %v691_v58 = vadd.f32 %v4602_v61, %v490_v59 }
  0xec   : > { %1908 = vmatpush.bf16.msra.mxu2 %v4162_v47  ;;  %2078 = vmatpush.bf16.msra.mxu3 %v4177_v0  ;;  %v4188_v47 = vld [vmem:[%s5365_s4 + $0xc0] sm:$0xff]  ;;  %v1526_v61 = vld [vmem:[#allocation2 + $0x8] sm:$0xf] }
  0xed   : > { %2212 = vmatpush.bf16.msra.mxu0 %v4189_v4  ;;  %v1130_v50 = vadd.f32 %v4632_v13, %v1047_v63  ;;  %v1577_v13 = vld [vmem:[#allocation2] sm:$0xf] }
  0xee   : > { %v4608_v1 = vpop.f32.mrf.mxu3  ;;  %v1610_v53 = vshrl.u32 %v1577_v13, 16  ;;  %v1613_v57 = vshll.u32 %v1577_v13, 16 }
  0xf0   : > { %v4618_v5 = vpop.f32.mrf.mxu0  ;;  %1909 = vmatpush.bf16.msra.mxu2 %v4161_v54  ;;  %v4734_v30 = vpop.f32.mrf.mxu1  ;;  %2079 = vmatpush.bf16.msra.mxu3 %v4176_v35  ;;  %v1612_v63 = vrot.slane %v1610_v53, 4  ;;  %v3670_v53 = vld [vmem:[#allocation2] sm:$0xf] }
  0xf1   : > { %v854_v6 = vadd.f32 %v4618_v5, %v4573_v41  ;;  %2213 = vmatpush.bf16.msra.mxu0 %v4188_v47  ;;  %v772_v41 = vadd.f32 %v4579_v44, %v689_v48 }
  0xf3   : > { %v4711_v2 = vpop.f32.mrf.mxu2  ;;  %v1048_v54 = vadd.f32 %v4642_v19, %v854_v6  ;;  %v1932_v6 = vld [vmem:[#allocation2] sm:$0xe] }
  0xf4   : > { %1910 = vmatpush.bf16.msra.mxu2 %v4160_v11  ;;  %v693_v11 = vadd.f32 %v4555_v9, %v495_v55  ;;  %v3716_v55 = vrot.slane %v1932_v6, 9 }
  0xf5   : > { %v1131_v15 = vadd.f32 %v4649_v23, %v1048_v54 }
  0xf6   : > { %v4622_v8 = vpop.f32.mrf.mxu3 }
  0xf7   : > { %v1212_v26 = vadd.f32 %v4622_v8, %v1129_v16  ;;  %v4169_v8 = vld [vmem:[%s5365_s4 + $0x48] sm:$0xff] }
  0xf8   : > { %v4630_v12 = vpop.f32.mrf.mxu0  ;;  %1808 = vmatpush.bf16.msra.mxu1 %v4169_v8  ;;  %v1041_v24 = vpop.f32.mrf.mxu1  ;;  %v1532_v16 = vld [vmem:[#allocation2 + $0xc] sm:$0x1] }
  0xfb   : > { %v4751_v39 = vpop.f32.mrf.mxu2 }
  0xfc   : > { %1809 = vmatpush.bf16.msra.mxu1 %v4168_v42 }
  0xfe   : > { %v4634_v14 = vpop.f32.mrf.mxu3 }
  0xff   : > { %v1213_v5 = vadd.f32 %v4634_v14, %v1130_v50  ;;  %v855_v14 = vadd.f32 %v4630_v12, %v772_v41 }
 0x100   : > { %v4644_v20 = vpop.f32.mrf.mxu0  ;;  %v1043_v59 = vpop.f32.mrf.mxu1 }
 0x101   : > { %v856_v18 = vadd.f32 %v4644_v20, %v4584_v36  ;;  %v774_v20 = vadd.f32 %v4588_v56, %v691_v58  ;;  %v776_v56 = vadd.f32 %v4608_v1, %v693_v11  ;;  %v1049_v9 = vadd.f32 %v4661_v29, %v855_v14 }
 0x103   : > { %v4790_v0 = vpop.f32.mrf.mxu2  ;;  %v1050_v21 = vadd.f32 %v4698_v49, %v856_v18  ;;  %v1535_v18 = vld [vmem:[#allocation2 + $0x10] sm:$0xf] }
 0x106   : > { %v4651_v25 = vpop.f32.mrf.mxu3 }
 0x107   : > { %v1214_v35 = vadd.f32 %v4651_v25, %v1131_v15  ;;  %v1133_v25 = vadd.f32 %v4711_v2, %v1050_v21  ;;  %v1132_v2 = vadd.f32 %v4669_v33, %v1049_v9  ;;  %v4203_v9 = vld [vmem:[%s5365_s4 + $0x138] sm:$0xff] }
 0x108   : > { %v4659_v28 = vpop.f32.mrf.mxu0  ;;  %2452 = vmatpush.bf16.msrb.mxu1 %v4203_v9 }
 0x109   : > { %v857_v47 = vadd.f32 %v4659_v28, %v774_v20 }
 0x10e   : > { %v4671_v34 = vpop.f32.mrf.mxu3 }
 0x110   : > { %v4682_v45 = vpop.f32.mrf.mxu0 }
 0x111   : > { %v858_v1 = vadd.f32 %v4682_v45, %v4594_v62 }
 0x113   : > { %v1052_v54 = vadd.f32 %v1041_v24, %v858_v1 }
 0x115   : > { %v1135_v21 = vadd.f32 %v4790_v0, %v1052_v54 }
 0x116   : > { %v4702_v52 = vpop.f32.mrf.mxu3 }
 0x117   : > { %v1216_v13 = vadd.f32 %v4702_v52, %v1133_v25 }
 0x118   : > { %v4713_v3 = vpop.f32.mrf.mxu0 }
 0x119   : > { %v859_v48 = vadd.f32 %v4713_v3, %v776_v56  ;;  %v1051_v3 = vadd.f32 %v4734_v30, %v857_v47 }
 0x11e   : > { %v4736_v22 = vpop.f32.mrf.mxu3 }
 0x120   : > { %v1386_v31 = vpop.f32.mrf.mxu0 }
 0x121   : > { %v1406_v32 = vadd.f32 %v1386_v31, %v1212_v26 }
 0x123   : > { %v1418_v46 = vadd.f32 %v4742_v27, %v1406_v32  ;;  %v1615_v32 = vrot.slane %v1613_v57, 5  ;;  %v1215_v57 = vadd.f32 %v4671_v34, %v1132_v2 }
 0x125   : > { %v1426_v51 = vmax.f32 %v1418_v46, 0.0  ;;  %v1601_v46 = vld [vmem:[#allocation2 + $0x4] sm:$0x1] }
 0x126   : > { %v4768_v38 = vpop.f32.mrf.mxu3  ;;  %v1961_v41 = vrot.slane %v1601_v46, 5 }
 0x127   : > { %v1434_v7 = vpack.c.bf16 %v1426_v51, %v1426_v51  ;;  %v4853_v25 = vadd.f32 %v4768_v38, %v1135_v21  ;;  %v4209_v21 = vld [vmem:[%s5365_s4 + $0x168] sm:$0xff] }
 0x128   : > { %v1388_v60 = vpop.f32.mrf.mxu0 }
 0x129   : > { %v1443_v43 = vshrl.u32 %v1434_v7, 16  ;;  %v1407_v44 = vadd.f32 %v1388_v60, %v1213_v5  ;;  %v1446_v19 = vshll.u32 %v1434_v7, 16  ;;  %v1616_v5 = vor.u32 %v1615_v32, %v1612_v63  ;;  %v1538_v60 = vld [vmem:[#allocation2 + $0x14] sm:$0x1] }
 0x12a   : > { %v1619_v7 = vshll.u32 %v1601_v46, 16 }
 0x12b   : > { %v1445_v17 = vrot.slane %v1443_v43, 7  ;;  %v1419_v36 = vadd.f32 %v4742_v27, %v1407_v44  ;;  %v1053_v43 = vadd.f32 %v1043_v59, %v859_v48  ;;  %v4827_v33 = vrot.slane %v1616_v5, 4  ;;  %v1541_v48 = vld [vmem:[#allocation2 + $0x18] sm:$0xf] }
 0x12c   : > { %v4829_v30 = vrot.slane %v1619_v7, 5 }
 0x12d   : > { %v1448_v26 = vor.u32 %v1446_v19, %v1445_v17  ;;  %v1449_v31 = vrot.slane %v1445_v17, 4  ;;  %v1427_v4 = vmax.f32 %v1419_v36, 0.0  ;;  %v1126_v17 = vpop.f32.mrf.mxu2  ;;  %v4825_v36 = vsel %vm4815_vm13, %v3716_v55, %v1961_v41 }
 0x12e   : > { %v4801_v23 = vpop.f32.mrf.mxu3  ;;  %v4845_v63 = vadd.f32 %v1126_v17, %v1053_v43 }
 0x12f   : > { %v1527_v8 = vsel %vm4782_vm9, %v1448_v26, %v1526_v61  ;;  %v1533_v40 = vsel %vm4794_vm10, %v1449_v31, %v1532_v16  ;;  %v1435_v49 = vpack.c.bf16 %v1427_v4, %v1427_v4  ;;  %v4211_v61 = vld [vmem:[%s5365_s4 + $0x178] sm:$0xff]  ;;  %v1134_v16 = vadd.f32 %v4751_v39, %v1051_v3 }
 0x130   : > { %1528 = vst [vmem:[#allocation2 + $0x8] sm:$0xf] %v1527_v8  ;;  %v1391_v29 = vpop.f32.mrf.mxu0  ;;  %2626 = vmatpush.bf16.msrb.mxu2 %v4211_v61 }
 0x131   : > { %1534 = vst [vmem:[#allocation2 + $0xc] sm:$0x1] %v1533_v40  ;;  %v1451_v50 = vshrl.u32 %v1435_v49, 16  ;;  %v1408_v51 = vadd.f32 %v1391_v29, %v1214_v35  ;;  %v1454_v42 = vshll.u32 %v1435_v49, 16  ;;  %v1217_v39 = vadd.f32 %v4736_v22, %v1134_v16 }
 0x132   : > { %v2008_v49 = vunpack.c.l.b16 %v4825_v36 }
 0x133   : > { %v1453_v28 = vrot.slane %v1451_v50, 7  ;;  %v1420_v62 = vadd.f32 %v4742_v27, %v1408_v51  ;;  %v1544_v50 = vld [vmem:[#allocation2 + $0x1c] sm:$0x1]  ;;  %v1622_v51 = vsel %vm4359_vm4, %v4827_v33, %v4829_v30 }
 0x135   : > { %v1456_v44 = vor.u32 %v1454_v42, %v1453_v28  ;;  %v1457_v58 = vrot.slane %v1453_v28, 4  ;;  %v1428_v14 = vmax.f32 %v1420_v62, 0.0 }
 0x136   : > { %v1396_v19 = vpop.f32.mrf.mxu3 }
 0x137   : > { %v1536_v52 = vsel %vm4782_vm9, %v1456_v44, %v1535_v18  ;;  %v1539_v24 = vsel %vm4794_vm10, %v1457_v58, %v1538_v60  ;;  %v1436_v20 = vpack.c.bf16 %v1428_v14, %v1428_v14  ;;  %v1410_v11 = vadd.f32 %v1396_v19, %v1216_v13  ;;  %v4156_v15 = vld [vmem:[#allocation2 + $0x4] sm:$0xf0]  ;;  %v4210_v44 = vld [vmem:[%s5365_s4 + $0x170] sm:$0xff] }
 0x138   : > { %v1933_v34 = vld [vmem:[#allocation2 + $0x8] sm:$0xe]  ;;  %1537 = vst [vmem:[#allocation2 + $0x10] sm:$0xf] %v1536_v52  ;;  %v1393_v26 = vpop.f32.mrf.mxu0  ;;  %v3671_v31 = vor.u32 %v4156_v15, %v3670_v53  ;;  %v4840_v4 = vld [vmem:[#allocation2 + $0xc] sm:$0x1]  ;;  %2627 = vmatpush.bf16.msrb.mxu2 %v4210_v44 }
 0x139   : > { %v3717_v56 = vrot.slane %v1933_v34, 9  ;;  %1540 = vst [vmem:[#allocation2 + $0x14] sm:$0x1] %v1539_v24  ;;  %v1459_v32 = vshrl.u32 %v1436_v20, 16  ;;  %v1422_v35 = vadd.f32 %v4742_v27, %v1410_v11  ;;  %v1409_v8 = vadd.f32 %v1393_v26, %v1215_v57  ;;  %v1578_v46 = vld [vmem:[#allocation2 + $0x8] sm:$0xf] }
 0x13a   : > { %v1462_v0 = vshll.u32 %v1436_v20, 16  ;;  %1911 = vmatmul.bf16.vlgmr.msra.gmra.mxu2 %v3671_v31  ;;  %v1965_v40 = vrot.slane %v4840_v4, 5  ;;  %v1624_v29 = vshrl.u32 %v1578_v46, 16  ;;  %v1627_v59 = vshll.u32 %v1578_v46, 16  ;;  %v3790_v62 = vld [vmem:[#allocation2 + $0x8] sm:$0xf] }
 0x13b   : > { %v1461_v6 = vrot.slane %v1459_v32, 7  ;;  %v1430_v47 = vmax.f32 %v1422_v35, 0.0  ;;  %v1421_v1 = vadd.f32 %v4742_v27, %v1409_v8  ;;  %v1633_v3 = vshll.u32 %v4840_v4, 16  ;;  %v4202_v58 = vld [vmem:[%s5365_s4 + $0x130] sm:$0xff]  ;;  %v1553_v14 = vld [vmem:[#allocation2 + $0x28] sm:$0xf] }
 0x13c   : > { %v1966_v22 = vsel %vm4815_vm13, %v3717_v56, %v1965_v40  ;;  %v1626_v38 = vrot.slane %v1624_v29, 4  ;;  %v1629_v2 = vrot.slane %v1627_v59, 5  ;;  %v1556_v53 = vld [vmem:[#allocation2 + $0x2c] sm:$0x1]  ;;  %v4874_v24 = vunpack.c.l.b16 %v1622_v51  ;;  %2453 = vmatpush.bf16.msrb.mxu1 %v4202_v58  ;;  %v4223_v40 = vld [vmem:[%s5365_s4 + $0x1b8] sm:$0xff]  ;;  %2628 = vmatpush.bf16.msrb.mxu2 %v4209_v21 }
 0x13d   : > { %v1464_v55 = vor.u32 %v1462_v0, %v1461_v6  ;;  %v1465_v41 = vrot.slane %v1461_v6, 4  ;;  %v1438_v5 = vpack.c.bf16 %v1430_v47, %v1430_v47  ;;  %v1429_v7 = vmax.f32 %v1421_v1, 0.0  ;;  %v4201_v32 = vld [vmem:[%s5365_s4 + $0x128] sm:$0xff]  ;;  %v1547_v47 = vld [vmem:[#allocation2 + $0x20] sm:$0xf]  ;;  %2761 = vmatpush.bf16.msrb.mxu3 %v4223_v40 }
 0x13e   : > { %v1398_v28 = vpop.f32.mrf.mxu3  ;;  %v2009_v42 = vunpack.c.l.b16 %v1966_v22  ;;  %v1630_v52 = vor.u32 %v1629_v2, %v1626_v38  ;;  %v1635_v61 = vrot.slane %v1633_v3, 5  ;;  %v1550_v1 = vld [vmem:[#allocation2 + $0x24] sm:$0x1] }
 0x13f   : > { %v1542_v13 = vsel %vm4782_vm9, %v1464_v55, %v1541_v48  ;;  %v1545_v54 = vsel %vm4794_vm10, %v1465_v41, %v1544_v50  ;;  %v1475_v18 = vshrl.u32 %v1438_v5, 16  ;;  %v1478_v60 = vshll.u32 %v1438_v5, 16  ;;  %v4184_v43 = vld [vmem:[#allocation2 + $0xc] sm:$0xf0]  ;;  %v4208_v50 = vld [vmem:[%s5365_s4 + $0x160] sm:$0xff] }
 0x140   : > { %1543 = vst [vmem:[#allocation2 + $0x18] sm:$0xf] %v1542_v13  ;;  %v1437_v57 = vpack.c.bf16 %v1429_v7, %v1429_v7  ;;  %v1411_v17 = vadd.f32 %v1398_v28, %v1217_v39  ;;  %v2016_v19 = vpack.c.b16 %v2009_v42, %v2008_v49  ;;  %v3791_v36 = vor.u32 %v4184_v43, %v3790_v62  ;;  %v4872_v33 = vld [vmem:[#allocation2 + $0x14] sm:$0x1]  ;;  %v1934_v20 = vld [vmem:[#allocation2 + $0x10] sm:$0xe] }
 0x141   : > { %1546 = vst [vmem:[#allocation2 + $0x1c] sm:$0x1] %v1545_v54  ;;  %v1477_v30 = vrot.slane %v1475_v18, 7  ;;  %v1969_v11 = vrot.slane %v4872_v33, 5  ;;  %v3718_v16 = vrot.slane %v1934_v20, 9  ;;  %v1631_v9 = vrot.slane %v1630_v52, 4  ;;  %2454 = vmatpush.bf16.msrb.mxu1 %v4201_v32  ;;  %2629 = vmatpush.bf16.msrb.mxu2 %v4208_v50 }
 0x142   : > { %v1467_v15 = vshrl.u32 %v1437_v57, 16  ;;  %v1423_v34 = vadd.f32 %v4742_v27, %v1411_v17  ;;  %2080 = vmatmul.bf16.vlgmr.msra.gmra.mxu3 %v2016_v19  ;;  %2214 = vmatmul.bf16.vlgmr.msra.gmra.mxu0 %v3791_v36  ;;  %v1579_v26 = vld [vmem:[#allocation2 + $0x10] sm:$0xf]  ;;  %v1470_v56 = vshll.u32 %v1437_v57, 16  ;;  %v4231_v49 = vld [vmem:[%s5365_s4 + $0x1f8] sm:$0xff]  ;;  %v4200_v5 = vld [vmem:[%s5365_s4 + $0x120] sm:$0xff]  ;;  %v1219_v28 = vadd.f32 %v4801_v23, %v4845_v63 }
 0x143   : > { %v1480_v31 = vor.u32 %v1478_v60, %v1477_v30  ;;  %v1481_v4 = vrot.slane %v1477_v30, 4  ;;  %v4886_v39 = vsel %vm4815_vm13, %v3718_v16, %v1969_v11  ;;  %v1638_v0 = vshrl.u32 %v1579_v26, 16  ;;  %3007 = vmatpush.bf16.msrb.mxu0 %v4231_v49  ;;  %v4222_v7 = vld [vmem:[%s5365_s4 + $0x1b0] sm:$0xff]  ;;  %v4207_v57 = vld [vmem:[%s5365_s4 + $0x158] sm:$0xff] }
 0x144   : > { %v1469_v35 = vrot.slane %v1467_v15, 7  ;;  %v1431_v8 = vmax.f32 %v1423_v34, 0.0  ;;  %v1636_v29 = vsel %vm4359_vm4, %v1631_v9, %v1635_v61  ;;  %v1641_v48 = vshll.u32 %v1579_v26, 16  ;;  %v3674_v60 = vld [vmem:[#allocation2 + $0x10] sm:$0xf]  ;;  %2762 = vmatpush.bf16.msrb.mxu3 %v4222_v7  ;;  %v4199_v15 = vld [vmem:[%s5365_s4 + $0x118] sm:$0xff] }
 0x145   : > { %v1554_v46 = vsel %vm4782_vm9, %v1480_v31, %v1553_v14  ;;  %v1557_v6 = vsel %vm4794_vm10, %v1481_v4, %v1556_v53  ;;  %v1739_v41 = vunpack.c.l.b16 %v1636_v29  ;;  %v2010_v2 = vunpack.c.l.b16 %v4886_v39  ;;  %v1559_v23 = vld [vmem:[#allocation2 + $0x30] sm:$0xf]  ;;  %v1562_v63 = vld [vmem:[#allocation2 + $0x34] sm:$0x1]  ;;  %2455 = vmatpush.bf16.msrb.mxu1 %v4200_v5  ;;  %2630 = vmatpush.bf16.msrb.mxu2 %v4207_v57  ;;  %v1565_v29 = vld [vmem:[#allocation2 + $0x38] sm:$0xf] }
 0x146   : > { %1555 = vst [vmem:[#allocation2 + $0x28] sm:$0xf] %v1554_v46  ;;  %v1472_v22 = vor.u32 %v1470_v56, %v1469_v35  ;;  %v1473_v51 = vrot.slane %v1469_v35, 4  ;;  %v1439_v59 = vpack.c.bf16 %v1431_v8, %v1431_v8  ;;  %v1401_v55 = vpop.f32.mrf.mxu3  ;;  %v1640_v36 = vrot.slane %v1638_v0, 4  ;;  %v4230_v34 = vld [vmem:[%s5365_s4 + $0x1f0] sm:$0xff]  ;;  %v4229_v35 = vld [vmem:[%s5365_s4 + $0x1e8] sm:$0xff] }
 0x147   : > { %1558 = vst [vmem:[#allocation2 + $0x2c] sm:$0x1] %v1557_v6  ;;  %v1412_v42 = vadd.f32 %v1401_v55, %v4853_v25  ;;  %v4157_v62 = vld [vmem:[#allocation2 + $0x14] sm:$0xf0]  ;;  %v1746_v44 = vpack.c.b16 %v1739_v41, %v4874_v24  ;;  %v1643_v30 = vrot.slane %v1641_v48, 5  ;;  %v1647_v24 = vshll.u32 %v4872_v33, 16  ;;  %3008 = vmatpush.bf16.msrb.mxu0 %v4230_v34 }
 0x148   : > { %v1935_v38 = vld [vmem:[#allocation2 + $0x18] sm:$0xe]  ;;  %v1548_v3 = vsel %vm4782_vm9, %v1472_v22, %v1547_v47  ;;  %v1551_v13 = vsel %vm4794_vm10, %v1473_v51, %v1550_v1  ;;  %v1483_v54 = vshrl.u32 %v1439_v59, 16  ;;  %v1486_v18 = vshll.u32 %v1439_v59, 16  ;;  %v4917_v43 = vld [vmem:[#allocation2 + $0x1c] sm:$0x1] }
 0x149   : > { %1549 = vst [vmem:[#allocation2 + $0x20] sm:$0xf] %v1548_v3  ;;  %v1424_v25 = vadd.f32 %v4742_v27, %v1412_v42  ;;  %v3675_v58 = vor.u32 %v4157_v62, %v3674_v60  ;;  %v3719_v14 = vrot.slane %v1935_v38, 9  ;;  %v1580_v53 = vld [vmem:[#allocation2 + $0x18] sm:$0xf]  ;;  %v1973_v19 = vrot.slane %v4917_v43, 5  ;;  %1810 = vmatmul.bf16.vlgmr.msra.gmra.mxu1 %v1746_v44 }
 0x14a   : > { %1552 = vst [vmem:[#allocation2 + $0x24] sm:$0x1] %v1551_v13  ;;  %v1485_v17 = vrot.slane %v1483_v54, 7  ;;  %v1652_v20 = vshrl.u32 %v1580_v53, 16  ;;  %v1655_v11 = vshll.u32 %v1580_v53, 16  ;;  %v1644_v26 = vor.u32 %v1643_v30, %v1640_v36  ;;  %v4221_v33 = vld [vmem:[%s5365_s4 + $0x1a8] sm:$0xff]  ;;  %2456 = vmatpush.bf16.msrb.mxu1 %v4199_v15 }
 0x14b   : > { %v1432_v52 = vmax.f32 %v1424_v25, 0.0  ;;  %1916 = vmatmul.bf16.gmra.mxu2 %v3675_v58  ;;  %v1974_v21 = vsel %vm4815_vm13, %v3719_v14, %v1973_v19  ;;  %v1649_v56 = vrot.slane %v1647_v24, 5  ;;  %v4206_v32 = vld [vmem:[%s5365_s4 + $0x150] sm:$0xff]  ;;  %2763 = vmatpush.bf16.msrb.mxu3 %v4221_v33  ;;  %v3794_v1 = vld [vmem:[#allocation2 + $0x18] sm:$0xf]  ;;  %v1661_v59 = vshll.u32 %v4917_v43, 16 }
 0x14c   : > { %v1488_v61 = vor.u32 %v1486_v18, %v1485_v17  ;;  %v1489_v16 = vrot.slane %v1485_v17, 4  ;;  %v2011_v4 = vunpack.c.l.b16 %v1974_v21  ;;  %v1654_v9 = vrot.slane %v1652_v20, 4  ;;  %v1568_v48 = vld [vmem:[#allocation2 + $0x3c] sm:$0x1]  ;;  %2631 = vmatpush.bf16.msrb.mxu2 %v4206_v32  ;;  %3009 = vmatpush.bf16.msrb.mxu0 %v4229_v35  ;;  %v4220_v38 = vld [vmem:[%s5365_s4 + $0x1a0] sm:$0xff]  ;;  %v4205_v17 = vld [vmem:[%s5365_s4 + $0x148] sm:$0xff] }
 0x14d   : > { %v1440_v31 = vpack.c.bf16 %v1432_v52, %v1432_v52  ;;  %v1645_v40 = vrot.slane %v1644_v26, 4  ;;  %v1657_v49 = vrot.slane %v1655_v11, 5  ;;  %v1937_v62 = vld [vmem:[#allocation2 + $0x28] sm:$0xe]  ;;  %v1663_v3 = vrot.slane %v1661_v59, 5  ;;  %v4228_v25 = vld [vmem:[%s5365_s4 + $0x1e0] sm:$0xff] }
 0x14e   : > { %v1560_v8 = vsel %vm4782_vm9, %v1488_v61, %v1559_v23  ;;  %v1563_v39 = vsel %vm4794_vm10, %v1489_v16, %v1562_v63  ;;  %v1403_v0 = vpop.f32.mrf.mxu3  ;;  %v2017_v47 = vpack.c.b16 %v2011_v4, %v2010_v2  ;;  %v4219_v57 = vld [vmem:[%s5365_s4 + $0x198] sm:$0xff]  ;;  %v1582_v20 = vld [vmem:[#allocation2 + $0x28] sm:$0xf]  ;;  %v3721_v15 = vrot.slane %v1937_v62, 9 }
 0x14f   : > { %1561 = vst [vmem:[#allocation2 + $0x30] sm:$0xf] %v1560_v8  ;;  %v1491_v46 = vshrl.u32 %v1440_v31, 16  ;;  %v1413_v6 = vadd.f32 %v1403_v0, %v1219_v28  ;;  %v1650_v22 = vsel %vm4359_vm4, %v1645_v40, %v1649_v56  ;;  %v1658_v51 = vor.u32 %v1657_v49, %v1654_v9  ;;  %v4953_v28 = vld [vmem:[#allocation2 + $0x2c] sm:$0x1]  ;;  %2764 = vmatpush.bf16.msrb.mxu3 %v4220_v38  ;;  %v4227_v11 = vld [vmem:[%s5365_s4 + $0x1d8] sm:$0xff] }
 0x150   : > { %1564 = vst [vmem:[#allocation2 + $0x34] sm:$0x1] %v1563_v39  ;;  %v4185_v50 = vld [vmem:[#allocation2 + $0x1c] sm:$0xf0]  ;;  %v1494_v41 = vshll.u32 %v1440_v31, 16  ;;  %v1740_v13 = vunpack.c.l.b16 %v1650_v22  ;;  %3010 = vmatpush.bf16.msrb.mxu0 %v4228_v25  ;;  %v1981_v34 = vrot.slane %v4953_v28, 5  ;;  %2632 = vmatpush.bf16.msrb.mxu2 %v4205_v17 }
 0x151   : > { %v1493_v55 = vrot.slane %v1491_v46, 7  ;;  %v1425_v5 = vadd.f32 %v4742_v27, %v1413_v6  ;;  %v3795_v7 = vor.u32 %v4185_v50, %v3794_v1  ;;  %v4951_v42 = vld [vmem:[#allocation2 + $0x24] sm:$0x1]  ;;  %v1659_v2 = vrot.slane %v1658_v51, 4  ;;  %v1936_v54 = vld [vmem:[#allocation2 + $0x20] sm:$0xe] }
 0x152   : > { %2085 = vmatmul.bf16.gmra.mxu3 %v2017_v47  ;;  %v4198_v27 = vld [vmem:[%s5365_s4 + $0x110] sm:$0xff]  ;;  %v1977_v23 = vrot.slane %v4951_v42, 5  ;;  %v1581_v63 = vld [vmem:[#allocation2 + $0x20] sm:$0xf]  ;;  %v3720_v58 = vrot.slane %v1936_v54, 9  ;;  %v1680_v35 = vshrl.u32 %v1582_v20, 16  ;;  %v1982_v40 = vsel %vm4815_vm13, %v3721_v15, %v1981_v34 }
 0x153   : > { %v1496_v18 = vor.u32 %v1494_v41, %v1493_v55  ;;  %v1497_v60 = vrot.slane %v1493_v55, 4  ;;  %v1433_v43 = vmax.f32 %v1425_v5, 0.0  ;;  %2219 = vmatmul.bf16.gmra.mxu0 %v3795_v7  ;;  %v1664_v44 = vsel %vm4359_vm4, %v1659_v2, %v1663_v3  ;;  %2457 = vmatpush.bf16.msrb.mxu1 %v4198_v27  ;;  %v3678_v24 = vld [vmem:[#allocation2 + $0x20] sm:$0xf]  ;;  %v4158_v33 = vld [vmem:[#allocation2 + $0x24] sm:$0xf0] }
 0x154   : > { %v1666_v14 = vshrl.u32 %v1581_v63, 16  ;;  %v1669_v53 = vshll.u32 %v1581_v63, 16  ;;  %v1741_v52 = vunpack.c.l.b16 %v1664_v44  ;;  %2765 = vmatpush.bf16.msrb.mxu3 %v4219_v57  ;;  %v3679_v31 = vor.u32 %v4158_v33, %v3678_v24  ;;  %v4218_v56 = vld [vmem:[%s5365_s4 + $0x190] sm:$0xff]  ;;  %3011 = vmatpush.bf16.msrb.mxu0 %v4227_v11  ;;  %v1571_v39 = vld [vmem:[#allocation2 + $0x40] sm:$0xf]  ;;  %v4217_v59 = vld [vmem:[%s5365_s4 + $0x188] sm:$0xff] }
 0x155   : > { %v1566_v19 = vsel %vm4782_vm9, %v1496_v18, %v1565_v29  ;;  %v1569_v36 = vsel %vm4794_vm10, %v1497_v60, %v1568_v48  ;;  %v1441_v30 = vpack.c.bf16 %v1433_v43, %v1433_v43  ;;  %v1978_v4 = vsel %vm4815_vm13, %v3720_v58, %v1977_v23  ;;  %v1574_v0 = vld [vmem:[#allocation2 + $0x44] sm:$0x1]  ;;  %v4197_v29 = vld [vmem:[%s5365_s4 + $0x108] sm:$0xff]  ;;  %v4226_v50 = vld [vmem:[%s5365_s4 + $0x1d0] sm:$0xff] }
 0x156   : > { %1567 = vst [vmem:[#allocation2 + $0x38] sm:$0xf] %v1566_v19  ;;  %v1668_v61 = vrot.slane %v1666_v14, 4  ;;  %v1671_v16 = vrot.slane %v1669_v53, 5  ;;  %v1747_v26 = vpack.c.b16 %v1741_v52, %v1740_v13  ;;  %v1683_v8 = vshll.u32 %v1582_v20, 16  ;;  %v4204_v48 = vld [vmem:[%s5365_s4 + $0x140] sm:$0xff] }
 0x157   : > { %1570 = vst [vmem:[#allocation2 + $0x3c] sm:$0x1] %v1569_v36  ;;  %v1499_v21 = vshrl.u32 %v1441_v30, 16  ;;  %v1502_v32 = vshll.u32 %v1441_v30, 16  ;;  %v1682_v47 = vrot.slane %v1680_v35, 4  ;;  %v2012_v22 = vunpack.c.l.b16 %v1978_v4  ;;  %2458 = vmatpush.bf16.msrb.mxu1 %v4197_v29  ;;  %2633 = vmatpush.bf16.msrb.mxu2 %v4204_v48  ;;  %v4225_v2 = vld [vmem:[%s5365_s4 + $0x1c8] sm:$0xff] }
 0x158   : > { %v1672_v49 = vor.u32 %v1671_v16, %v1668_v61  ;;  %v1685_v1 = vrot.slane %v1683_v8, 5  ;;  %v1675_v51 = vshll.u32 %v4951_v42, 16  ;;  %2766 = vmatpush.bf16.msrb.mxu3 %v4218_v56  ;;  %v4186_v5 = vld [vmem:[#allocation2 + $0x2c] sm:$0xf0]  ;;  %v2013_v62 = vunpack.c.l.b16 %v1982_v40  ;;  %3012 = vmatpush.bf16.msrb.mxu0 %v4226_v50  ;;  %v3798_v13 = vld [vmem:[#allocation2 + $0x28] sm:$0xf] }
 0x159   : > { %v1501_v9 = vrot.slane %v1499_v21, 7  ;;  %1815 = vmatmul.bf16.gmra.mxu1 %v1747_v26  ;;  %v1689_v42 = vshll.u32 %v4953_v28, 16  ;;  %v4216_v27 = vld [vmem:[%s5365_s4 + $0x180] sm:$0xff]  ;;  %v3799_v18 = vor.u32 %v4186_v5, %v3798_v13  ;;  %v1583_v23 = vld [vmem:[#allocation2 + $0x30] sm:$0xf] }
 0x15a   : > { %v1686_v7 = vor.u32 %v1685_v1, %v1682_v47  ;;  %v1673_v38 = vrot.slane %v1672_v49, 4  ;;  %v2018_v3 = vpack.c.b16 %v2013_v62, %v2012_v22  ;;  %v1677_v12 = vrot.slane %v1675_v51, 5  ;;  %v4196_v28 = vld [vmem:[%s5365_s4 + $0x100] sm:$0xff]  ;;  %v5025_v57 = vld [vmem:[#allocation2 + $0x34] sm:$0x1] }
 0x15b   : > { %v1504_v46 = vor.u32 %v1502_v32, %v1501_v9  ;;  %v1505_v6 = vrot.slane %v1501_v9, 4  ;;  %1921 = vmatmul.bf16.gmra.mxu2 %v3679_v31  ;;  %v1691_v25 = vrot.slane %v1689_v42, 5  ;;  %v4224_v14 = vld [vmem:[%s5365_s4 + $0x1c0] sm:$0xff]  ;;  %v1938_v17 = vld [vmem:[#allocation2 + $0x30] sm:$0xe]  ;;  %2459 = vmatpush.bf16.msrb.mxu1 %v4196_v28  ;;  %v1694_v30 = vshrl.u32 %v1583_v23, 16 }
 0x15c   : > { %v1687_v54 = vrot.slane %v1686_v7, 4  ;;  %2767 = vmatpush.bf16.msrb.mxu3 %v4217_v59  ;;  %v1678_v63 = vsel %vm4359_vm4, %v1673_v38, %v1677_v12  ;;  %3013 = vmatpush.bf16.msrb.mxu0 %v4225_v2  ;;  %v3226_v53 = vld [vmem:[%s5367_s6] sm:$0x3]  ;;  %v1697_v52 = vshll.u32 %v1583_v23, 16  ;;  %v2800_v34 = vld [vmem:[#allocation2 + $0x18] sm:$0xf] }
 0x15d   : > { %v1572_v55 = vsel %vm4782_vm9, %v1504_v46, %v1571_v39  ;;  %v1575_v41 = vsel %vm4794_vm10, %v1505_v6, %v1574_v0  ;;  %v1584_v10 = vld [vmem:[#allocation2 + $0x38] sm:$0xf]  ;;  %v3264_v24 = vsel %vm400_vm0, %v3226_v53, 0  ;;  %v1742_v20 = vunpack.c.l.b16 %v1678_v63  ;;  %v3682_v61 = vld [vmem:[#allocation2 + $0x30] sm:$0xf] }
 0x15e   : > { %1573 = vst [vmem:[#allocation2 + $0x40] sm:$0xf] %v1572_v55  ;;  %v5015_v60 = vld [vmem:[#allocation2 + $0x3c] sm:$0x1]  ;;  %v1939_v43 = vld [vmem:[#allocation2 + $0x38] sm:$0xe]  ;;  %v1692_v19 = vsel %vm4359_vm4, %v1687_v54, %v1691_v25  ;;  %3273 = vmatpush.bf16.msra.mxu2 %v3264_v24 }
 0x15f   : > { %1576 = vst [vmem:[#allocation2 + $0x44] sm:$0x1] %v1575_v41  ;;  %v1708_v44 = vshrl.u32 %v1584_v10, 16  ;;  %v1711_v58 = vshll.u32 %v1584_v10, 16  ;;  %v4159_v36 = vld [vmem:[#allocation2 + $0x34] sm:$0xf0]  ;;  %v1743_v33 = vunpack.c.l.b16 %v1692_v19 }
 0x160   : > { %2768 = vmatpush.bf16.msrb.mxu3 %v4216_v27  ;;  %v3723_v11 = vrot.slane %v1939_v43, 9  ;;  %v1989_v15 = vrot.slane %v5015_v60, 5  ;;  %3014 = vmatpush.bf16.msrb.mxu0 %v4224_v14  ;;  %v2798_v26 = vld [vmem:[#allocation2 + $0x10] sm:$0xf]  ;;  %v3683_v31 = vor.u32 %v4159_v36, %v3682_v61  ;;  %v3722_v4 = vrot.slane %v1938_v17, 9  ;;  %v4239_v55 = vld [vmem:[%s5365_s4 + $0x238] sm:$0xff] }
 0x161   : > { %v1710_v16 = vrot.slane %v1708_v44, 4  ;;  %v1713_v21 = vrot.slane %v1711_v58, 5  ;;  %v1985_v56 = vrot.slane %v5025_v57, 5  ;;  %v5032_v9 = vld [vmem:[#allocation2 + $0x14] sm:$0x1]  ;;  %v1696_v35 = vrot.slane %v1694_v30, 4  ;;  %3181 = vmatpush.bf16.msra.mxu1 %v4239_v55 }
 0x162   : > { %2090 = vmatmul.bf16.gmra.mxu3 %v2018_v3  ;;  %v2490_v32 = vld [vmem:[#allocation2 + $0x10] sm:$0xe]  ;;  %v1699_v8 = vrot.slane %v1697_v52, 5  ;;  %v5034_v39 = vld [vmem:[#allocation2 + $0xc] sm:$0x1]  ;;  %v2829_v0 = vshrl.u32 %v2800_v34, 16  ;;  %v1748_v49 = vpack.c.b16 %v1743_v33, %v1742_v20  ;;  %v1990_v46 = vsel %vm4815_vm13, %v3723_v11, %v1989_v15 }
 0x163   : > { %2224 = vmatmul.bf16.gmra.mxu0 %v3799_v18  ;;  %v2832_v40 = vshll.u32 %v2800_v34, 16  ;;  %v2815_v6 = vshrl.u32 %v2798_v26, 16  ;;  %v2818_v47 = vshll.u32 %v2798_v26, 16  ;;  %v1714_v1 = vor.u32 %v1713_v21, %v1710_v16  ;;  %v2489_v29 = vld [vmem:[#allocation2 + $0x8] sm:$0xe]  ;;  %v4238_v12 = vld [vmem:[%s5365_s4 + $0x230] sm:$0xff] }
 0x164   : > { %v3885_v48 = vrot.slane %v2490_v32, 9  ;;  %v2519_v50 = vrot.slane %v5032_v9, 5  ;;  %v1986_v22 = vsel %vm4815_vm13, %v3722_v4, %v1985_v56  ;;  %v1717_v51 = vshll.u32 %v5015_v60, 16  ;;  %v2243_v38 = vld [vmem:[#allocation2 + $0x8] sm:$0xf] }
 0x165   : > { %v2515_v59 = vrot.slane %v5034_v39, 5  ;;  %v2015_v41 = vunpack.c.l.b16 %v1990_v46  ;;  %v1700_v5 = vor.u32 %v1699_v8, %v1696_v35  ;;  %v2831_v7 = vrot.slane %v2829_v0, 4  ;;  %v2245_v42 = vld [vmem:[#allocation2 + $0x10] sm:$0xf]  ;;  %v4187_v27 = vld [vmem:[#allocation2 + $0x3c] sm:$0xf0]  ;;  %3182 = vmatpush.bf16.msra.mxu1 %v4238_v12 }
 0x166   : > { %v2834_v62 = vrot.slane %v2832_v40, 5  ;;  %v1703_v2 = vshll.u32 %v5025_v57, 16  ;;  %v3884_v10 = vrot.slane %v2489_v29, 9  ;;  %v2817_v3 = vrot.slane %v2815_v6, 4  ;;  %v5052_v60 = vld [vmem:[#allocation2 + $0x14] sm:$0x1] }
 0x167   : > { %v2820_v13 = vrot.slane %v2818_v47, 5  ;;  %v2014_v54 = vunpack.c.l.b16 %v1986_v22  ;;  %v1715_v28 = vrot.slane %v1714_v1, 4  ;;  %v2520_v18 = vsel %vm4815_vm13, %v3885_v48, %v2519_v50  ;;  %v5054_v43 = vld [vmem:[#allocation2 + $0x1c] sm:$0x1]  ;;  %v3802_v14 = vld [vmem:[#allocation2 + $0x38] sm:$0xf] }
 0x168   : > { %v2260_v23 = vshrl.u32 %v2243_v38, 16  ;;  %v2263_v63 = vshll.u32 %v2243_v38, 16  ;;  %v2274_v25 = vshrl.u32 %v2245_v42, 16  ;;  %v2277_v44 = vshll.u32 %v2245_v42, 16  ;;  %v5062_v34 = vld [vmem:[#allocation2 + $0x14] sm:$0xf0] }
 0x169   : > { %1820 = vmatmul.bf16.gmra.mxu1 %v1748_v49  ;;  %v2019_v58 = vpack.c.b16 %v2015_v41, %v2014_v54  ;;  %v1701_v53 = vrot.slane %v1700_v5, 4  ;;  %v1719_v57 = vrot.slane %v1717_v51, 5  ;;  %v2835_v17 = vor.u32 %v2834_v62, %v2831_v7  ;;  %v5066_v32 = vld [vmem:[#allocation2 + $0x10] sm:$0xf]  ;;  %v2802_v8 = vld [vmem:[#allocation2 + $0x20] sm:$0xf] }
 0x16a   : > { %v3803_v19 = vor.u32 %v4187_v27, %v3802_v14  ;;  %v1705_v36 = vrot.slane %v1703_v2, 5  ;;  %v2516_v30 = vsel %vm4815_vm13, %v3884_v10, %v2515_v59  ;;  %v2821_v52 = vor.u32 %v2820_v13, %v2817_v3  ;;  %v5070_v46 = vld [vmem:[#allocation2 + $0x1c] sm:$0x1]  ;;  %v2491_v6 = vld [vmem:[#allocation2 + $0x18] sm:$0xe] }
 0x16b   : > { %1926 = vmatmul.bf16.gmra.mxu2 %v3683_v31  ;;  %v1720_v24 = vsel %vm4359_vm4, %v1715_v28, %v1719_v57  ;;  %v2563_v20 = vunpack.c.l.b16 %v2520_v18  ;;  %v2824_v11 = vshll.u32 %v5052_v60, 16  ;;  %v2838_v15 = vshll.u32 %v5054_v43, 16  ;;  %v2492_v50 = vld [vmem:[#allocation2 + $0x20] sm:$0xe]  ;;  %v2804_v22 = vld [vmem:[#allocation2 + $0x28] sm:$0xf] }
 0x16c   : > { %v2262_v61 = vrot.slane %v2260_v23, 4  ;;  %v2265_v16 = vrot.slane %v2263_v63, 5  ;;  %v2276_v21 = vrot.slane %v2274_v25, 4  ;;  %v2279_v26 = vrot.slane %v2277_v44, 5  ;;  %v5075_v55 = vld [vmem:[#allocation2 + $0x24] sm:$0x1] }
 0x16d   : > { %v1706_v33 = vsel %vm4359_vm4, %v1701_v53, %v1705_v36  ;;  %v2562_v31 = vunpack.c.l.b16 %v2516_v30  ;;  %v2836_v4 = vrot.slane %v2835_v17, 4  ;;  %v1745_v56 = vunpack.c.l.b16 %v1720_v24  ;;  %v2249_v2 = vld [vmem:[#allocation2 + $0x20] sm:$0xf]  ;;  %v2247_v54 = vld [vmem:[#allocation2 + $0x18] sm:$0xf]  ;;  %v4237_v23 = vld [vmem:[%s5365_s4 + $0x228] sm:$0xff] }
 0x16e   : > { %v2822_v35 = vrot.slane %v2821_v52, 4  ;;  %v3959_v40 = vor.u32 %v5062_v34, %v5066_v32  ;;  %v2840_v49 = vrot.slane %v2838_v15, 5  ;;  %v1744_v47 = vunpack.c.l.b16 %v1706_v33  ;;  %3183 = vmatpush.bf16.msra.mxu1 %v4237_v23 }
 0x16f   : > { %v2570_v0 = vpack.c.b16 %v2563_v20, %v2562_v31  ;;  %v2826_v1 = vrot.slane %v2824_v11, 5  ;;  %v2266_v29 = vor.u32 %v2265_v16, %v2262_v61  ;;  %v2280_v48 = vor.u32 %v2279_v26, %v2276_v21  ;;  %v2806_v20 = vld [vmem:[#allocation2 + $0x30] sm:$0xf]  ;;  %v2808_v16 = vld [vmem:[#allocation2 + $0x38] sm:$0xf] }
 0x170   : > { %v2841_v51 = vsel %vm4359_vm4, %v2836_v4, %v2840_v49  ;;  %v2269_v59 = vshll.u32 %v5034_v39, 16  ;;  %v2843_v41 = vshrl.u32 %v2802_v8, 16  ;;  %v2846_v5 = vshll.u32 %v2802_v8, 16  ;;  %v5099_v4 = vld [vmem:[#allocation2 + $0x2c] sm:$0x1] }
 0x171   : > { %v1749_v7 = vpack.c.b16 %v1745_v56, %v1744_v47  ;;  %v2827_v62 = vsel %vm4359_vm4, %v2822_v35, %v2826_v1  ;;  %v2283_v38 = vshll.u32 %v5032_v9, 16  ;;  %v3886_v42 = vrot.slane %v2491_v6, 9  ;;  %v5085_v9 = vld [vmem:[#allocation2 + $0x24] sm:$0x1] }
 0x172   : > { %2095 = vmatmul.bf16.gmra.mxu3 %v2019_v58  ;;  %v2523_v10 = vrot.slane %v5070_v46, 5  ;;  %v3887_v3 = vrot.slane %v2492_v50, 9  ;;  %v2857_v13 = vshrl.u32 %v2804_v22, 16  ;;  %v2860_v12 = vshll.u32 %v2804_v22, 16 }
 0x173   : > { %2229 = vmatmul.bf16.gmra.mxu0 %v3803_v19  ;;  %v2944_v39 = vunpack.c.l.b16 %v2841_v51  ;;  %v2267_v27 = vrot.slane %v2266_v29, 4  ;;  %v2281_v28 = vrot.slane %v2280_v48, 4  ;;  %v2527_v18 = vrot.slane %v5075_v55, 5  ;;  %v4236_v19 = vld [vmem:[%s5365_s4 + $0x220] sm:$0xff] }
 0x174   : > { %v2845_v63 = vrot.slane %v2843_v41, 4  ;;  %v2848_v25 = vrot.slane %v2846_v5, 5  ;;  %v2302_v44 = vshrl.u32 %v2249_v2, 16  ;;  %v2305_v58 = vshll.u32 %v2249_v2, 16  ;;  %3184 = vmatpush.bf16.msra.mxu1 %v4236_v19  ;;  %v5102_v41 = vld [vmem:[#allocation2 + $0x34] sm:$0x1] }
 0x175   : > { %v2943_v14 = vunpack.c.l.b16 %v2827_v62  ;;  %v2271_v53 = vrot.slane %v2269_v59, 5  ;;  %v2288_v57 = vshrl.u32 %v2247_v54, 16  ;;  %v2291_v17 = vshll.u32 %v2247_v54, 16  ;;  %v2494_v5 = vld [vmem:[#allocation2 + $0x30] sm:$0xe] }
 0x176   : > { %v2285_v36 = vrot.slane %v2283_v38, 5  ;;  %v2524_v30 = vsel %vm4815_vm13, %v3886_v42, %v2523_v10  ;;  %v2859_v52 = vrot.slane %v2857_v13, 4  ;;  %v2862_v24 = vrot.slane %v2860_v12, 5 }
 0x177   : > { %v2951_v11 = vpack.c.b16 %v2944_v39, %v2943_v14  ;;  %v2272_v15 = vsel %vm4359_vm4, %v2267_v27, %v2271_v53  ;;  %v2528_v34 = vsel %vm4815_vm13, %v3887_v3, %v2527_v18  ;;  %v2852_v61 = vshll.u32 %v5085_v9, 16  ;;  %v2493_v3 = vld [vmem:[#allocation2 + $0x28] sm:$0xe]  ;;  %v5114_v14 = vld [vmem:[#allocation2 + $0x3c] sm:$0x1] }
 0x178   : > { %v2286_v21 = vsel %vm4359_vm4, %v2281_v28, %v2285_v36  ;;  %v2849_v26 = vor.u32 %v2848_v25, %v2845_v63  ;;  %v2304_v33 = vrot.slane %v2302_v44, 4  ;;  %v2307_v31 = vrot.slane %v2305_v58, 5  ;;  %v5111_v63 = vld [vmem:[#allocation2 + $0x34] sm:$0x1]  ;;  %v2251_v25 = vld [vmem:[#allocation2 + $0x28] sm:$0xf] }
 0x179   : > { %1825 = vmatmul.bf16.gmra.mxu1 %v1749_v7  ;;  %v2290_v56 = vrot.slane %v2288_v57, 4  ;;  %v2293_v32 = vrot.slane %v2291_v17, 5  ;;  %v2871_v35 = vshrl.u32 %v2806_v20, 16  ;;  %v2874_v8 = vshll.u32 %v2806_v20, 16 }
 0x17a   : > { %v2885_v49 = vshrl.u32 %v2808_v16, 16  ;;  %v2888_v6 = vshll.u32 %v2808_v16, 16  ;;  %v2388_v47 = vunpack.c.l.b16 %v2272_v15  ;;  %v2564_v1 = vunpack.c.l.b16 %v2524_v30  ;;  %v4235_v15 = vld [vmem:[%s5365_s4 + $0x218] sm:$0xff] }
 0x17b   : > { %2634 = vmatmul.bf16.vlgmr.msrb.gmra.mxu2 %v2570_v0  ;;  %v2863_v0 = vor.u32 %v2862_v24, %v2859_v52  ;;  %v2565_v29 = vunpack.c.l.b16 %v2528_v34  ;;  %v2854_v48 = vrot.slane %v2852_v61, 5  ;;  %v2389_v50 = vunpack.c.l.b16 %v2286_v21  ;;  %v2253_v24 = vld [vmem:[#allocation2 + $0x30] sm:$0xf]  ;;  %v3962_v21 = vld [vmem:[#allocation2 + $0x20] sm:$0xf]  ;;  %3185 = vmatpush.bf16.msra.mxu1 %v4235_v15 }
 0x17c   : > { %v2850_v22 = vrot.slane %v2849_v26, 4  ;;  %v2866_v51 = vshll.u32 %v5099_v4, 16  ;;  %v2308_v59 = vor.u32 %v2307_v31, %v2304_v33  ;;  %v2294_v7 = vor.u32 %v2293_v32, %v2290_v56  ;;  %v4234_v32 = vld [vmem:[%s5365_s4 + $0x210] sm:$0xff] }
 0x17d   : > { %v2297_v62 = vshll.u32 %v5070_v46, 16  ;;  %v2873_v38 = vrot.slane %v2871_v35, 4  ;;  %v2876_v42 = vrot.slane %v2874_v8, 5  ;;  %v2864_v2 = vrot.slane %v2863_v0, 4 }
 0x17e   : > { %v2311_v10 = vshll.u32 %v5075_v55, 16  ;;  %v2887_v13 = vrot.slane %v2885_v49, 4  ;;  %v2890_v12 = vrot.slane %v2888_v6, 5  ;;  %v2571_v54 = vpack.c.b16 %v2565_v29, %v2564_v1  ;;  %v4213_v6 = vld [vmem:[#allocation2 + $0x24] sm:$0xf0] }
 0x17f   : > { %v3889_v39 = vrot.slane %v2494_v5, 9  ;;  %v2535_v27 = vrot.slane %v5102_v41, 5  ;;  %v2396_v28 = vpack.c.b16 %v2389_v50, %v2388_v47  ;;  %v2855_v18 = vsel %vm4359_vm4, %v2850_v22, %v2854_v48  ;;  %3186 = vmatpush.bf16.msra.mxu1 %v4234_v32 }
 0x180   : > { %v2868_v23 = vrot.slane %v2866_v51, 5  ;;  %v2309_v46 = vrot.slane %v2308_v59, 4  ;;  %v2295_v44 = vrot.slane %v2294_v7, 4  ;;  %v3888_v58 = vrot.slane %v2493_v3, 9  ;;  %v5136_v51 = vld [vmem:[#allocation2 + $0x30] sm:$0xf] }
 0x181   : > { %v2877_v53 = vor.u32 %v2876_v42, %v2873_v38  ;;  %v2299_v17 = vrot.slane %v2297_v62, 5  ;;  %v2313_v19 = vrot.slane %v2311_v10, 5  ;;  %v2891_v36 = vor.u32 %v2890_v12, %v2887_v13  ;;  %v5138_v59 = vld [vmem:[#allocation2 + $0x34] sm:$0xf0]  ;;  %v5144_v10 = vld [vmem:[#allocation2 + $0x44] sm:$0x1] }
 0x182   : > { %2769 = vmatmul.bf16.vlgmr.msrb.gmra.mxu3 %v3959_v40  ;;  %v5105_v40 = vld [vmem:[#allocation2 + $0x2c] sm:$0x1]  ;;  %v2869_v57 = vsel %vm4359_vm4, %v2864_v2, %v2868_v23  ;;  %v2536_v30 = vsel %vm4815_vm13, %v3889_v39, %v2535_v27  ;;  %v2880_v52 = vshll.u32 %v5111_v63, 16  ;;  %v2316_v20 = vshrl.u32 %v2251_v25, 16  ;;  %v2496_v3 = vld [vmem:[#allocation2 + $0x40] sm:$0xe] }
 0x183   : > { %3015 = vmatmul.bf16.vlgmr.msrb.gmra.mxu0 %v2951_v11  ;;  %v2531_v55 = vrot.slane %v5105_v40, 5  ;;  %v2319_v11 = vshll.u32 %v2251_v25, 16  ;;  %v2945_v34 = vunpack.c.l.b16 %v2855_v18  ;;  %v2314_v61 = vsel %vm4359_vm4, %v2309_v46, %v2313_v19  ;;  %v5148_v39 = vld [vmem:[#allocation2 + $0x3c] sm:$0x1]  ;;  %v2810_v23 = vld [vmem:[#allocation2 + $0x40] sm:$0xf] }
 0x184   : > { %v2894_v16 = vshll.u32 %v5114_v14, 16  ;;  %v2946_v26 = vunpack.c.l.b16 %v2869_v57  ;;  %v2300_v33 = vsel %vm4359_vm4, %v2295_v44, %v2299_v17  ;;  %v2878_v56 = vrot.slane %v2877_v53, 4  ;;  %v3044_v46 = vld [vmem:[#allocation2 + $0x10] sm:$0xe]  ;;  %v3045_v25 = vld [vmem:[#allocation2 + $0x18] sm:$0xe] }
 0x185   : > { %v2532_v31 = vsel %vm4815_vm13, %v3888_v58, %v2531_v55  ;;  %v2567_v35 = vunpack.c.l.b16 %v2536_v30  ;;  %v2892_v8 = vrot.slane %v2891_v36, 4  ;;  %v2330_v0 = vshrl.u32 %v2253_v24, 16  ;;  %v2812_v57 = vld [vmem:[#allocation2 + $0x48] sm:$0xf] }
 0x186   : > { %v2333_v49 = vshll.u32 %v2253_v24, 16  ;;  %v5134_v47 = vunpack.c.l.b16 %v2314_v61  ;;  %v2882_v1 = vrot.slane %v2880_v52, 5  ;;  %v2318_v29 = vrot.slane %v2316_v20, 4  ;;  %v3046_v52 = vld [vmem:[#allocation2 + $0x20] sm:$0xe] }
 0x187   : > { %v2321_v48 = vrot.slane %v2319_v11, 5  ;;  %v3963_v50 = vor.u32 %v4213_v6, %v3962_v21  ;;  %v2952_v22 = vpack.c.b16 %v2946_v26, %v2945_v34  ;;  %v2896_v5 = vrot.slane %v2894_v16, 5  ;;  %v3047_v34 = vld [vmem:[#allocation2 + $0x28] sm:$0xe] }
 0x188   : > { %v2325_v7 = vshll.u32 %v5105_v40, 16  ;;  %v2390_v62 = vunpack.c.l.b16 %v2300_v33  ;;  %v2566_v38 = vunpack.c.l.b16 %v2532_v31  ;;  %v2883_v42 = vsel %vm4359_vm4, %v2878_v56, %v2882_v1  ;;  %v5150_v40 = vld [vmem:[#allocation2 + $0x38] sm:$0xe] }
 0x189   : > { %2460 = vmatmul.bf16.vlgmr.msrb.gmra.mxu1 %v2396_v28  ;;  %v2339_v2 = vshll.u32 %v5102_v41, 16  ;;  %v2897_v13 = vsel %vm4359_vm4, %v2892_v8, %v2896_v5  ;;  %v2332_v12 = vrot.slane %v2330_v0, 4  ;;  %v3967_v41 = vor.u32 %v5138_v59, %v5136_v51 }
 0x18a   : > { %v2397_v27 = vpack.c.b16 %v5134_v47, %v2390_v62  ;;  %v2572_v28 = vpack.c.b16 %v2567_v35, %v2566_v38  ;;  %v2322_v18 = vor.u32 %v2321_v48, %v2318_v29  ;;  %v5155_v44 = vunpack.c.l.b16 %v2883_v42  ;;  %v3049_v29 = vld [vmem:[#allocation2 + $0x38] sm:$0xe]  ;;  %v2811_v48 = vld [vmem:[#allocation2 + $0x44] sm:$0x1]  ;;  %v3050_v62 = vld [vmem:[#allocation2 + $0x40] sm:$0xe] }
 0x18b   : > { %2639 = vmatmul.bf16.gmra.mxu2 %v2571_v54  ;;  %v2335_v54 = vrot.slane %v2333_v49, 5  ;;  %v5157_v58 = vrot.slane %v2325_v7, 5  ;;  %v3891_v55 = vrot.slane %v2496_v3, 9  ;;  %v2543_v53 = vrot.slane %v5144_v10, 5 }
 0x18c   : > { %v5160_v17 = vunpack.c.l.b16 %v2897_v13  ;;  %v5162_v19 = vrot.slane %v2339_v2, 5  ;;  %v3890_v36 = vrot.slane %v5150_v40, 9  ;;  %v2539_v30 = vrot.slane %v5148_v39, 5  ;;  %v3051_v13 = vld [vmem:[#allocation2 + $0x48] sm:$0xe] }
 0x18d   : > { %v2336_v24 = vor.u32 %v2335_v54, %v2332_v12  ;;  %v2899_v20 = vshrl.u32 %v2810_v23, 16  ;;  %v2902_v11 = vshll.u32 %v2810_v23, 16  ;;  %v4052_v15 = vrot.slane %v3044_v46, 9  ;;  %v2813_v12 = vld [vmem:[#allocation2 + $0x4c] sm:$0x1] }
 0x18e   : > { %v5166_v61 = vrot.slane %v2322_v18, 4  ;;  %v3070_v16 = vrot.slane %v5052_v60, 5  ;;  %v4053_v21 = vrot.slane %v3045_v25, 9  ;;  %v3074_v26 = vrot.slane %v5054_v43, 5  ;;  %v3048_v60 = vld [vmem:[#allocation2 + $0x30] sm:$0xe] }
 0x18f   : > { %v5172_v33 = vsel %vm4815_vm13, %v3891_v55, %v2543_v53  ;;  %v2913_v31 = vshrl.u32 %v2812_v57, 16  ;;  %v2916_v56 = vshll.u32 %v2812_v57, 16  ;;  %v4054_v32 = vrot.slane %v3046_v52, 9  ;;  %v2257_v53 = vld [vmem:[#allocation2 + $0x40] sm:$0xf] }
 0x190   : > { %v3071_v35 = vsel %vm4815_vm13, %v4052_v15, %v3070_v16  ;;  %v3075_v8 = vsel %vm4815_vm13, %v4053_v21, %v3074_v26  ;;  %v3078_v0 = vrot.slane %v5085_v9, 5  ;;  %v4055_v49 = vrot.slane %v3047_v34, 9  ;;  %v2255_v34 = vld [vmem:[#allocation2 + $0x38] sm:$0xf] }
 0x191   : > { %v2953_v43 = vpack.c.b16 %v5160_v17, %v5155_v44  ;;  %v2337_v6 = vrot.slane %v2336_v24, 4  ;;  %v2901_v47 = vrot.slane %v2899_v20, 4  ;;  %v2904_v1 = vrot.slane %v2902_v11, 5 }
 0x192   : > { %2774 = vmatmul.bf16.gmra.mxu3 %v3963_v50  ;;  %v4233_v50 = vld [vmem:[%s5365_s4 + $0x208] sm:$0xff]  ;;  %v3118_v5 = vunpack.c.l.b16 %v3075_v8  ;;  %v3079_v9 = vsel %vm4815_vm13, %v4054_v32, %v3078_v0  ;;  %v3082_v7 = vrot.slane %v5099_v4, 5  ;;  %v2915_v38 = vrot.slane %v2913_v31, 4 }
 0x193   : > { %3020 = vmatmul.bf16.gmra.mxu0 %v2952_v22  ;;  %v3117_v22 = vunpack.c.l.b16 %v3071_v35  ;;  %v3119_v42 = vunpack.c.l.b16 %v3079_v9  ;;  %v4056_v2 = vrot.slane %v3048_v60, 9  ;;  %v3086_v3 = vrot.slane %v5111_v63, 5  ;;  %3187 = vmatpush.bf16.msra.mxu1 %v4233_v50 }
 0x194   : > { %v2918_v54 = vrot.slane %v2916_v56, 5  ;;  %v3083_v18 = vsel %vm4815_vm13, %v4055_v49, %v3082_v7  ;;  %v4057_v4 = vrot.slane %v3049_v29, 9  ;;  %v3090_v63 = vrot.slane %v5114_v14, 5 }
 0x195   : > { %v3120_v23 = vunpack.c.l.b16 %v3083_v18  ;;  %v3087_v46 = vsel %vm4815_vm13, %v4056_v2, %v3086_v3  ;;  %v4058_v25 = vrot.slane %v3050_v62, 9  ;;  %v2342_v44 = vsel %vm4359_vm4, %v2337_v6, %v5162_v19  ;;  %v3970_v62 = vld [vmem:[#allocation2 + $0x40] sm:$0xf] }
 0x196   : > { %v2905_v55 = vor.u32 %v2904_v1, %v2901_v47  ;;  %v3094_v57 = vrot.slane %v2811_v48, 5  ;;  %v4059_v17 = vrot.slane %v3051_v13, 9  ;;  %v2922_v52 = vshll.u32 %v2813_v12, 16 }
 0x197   : > { %v5201_v24 = vpack.c.b16 %v3120_v23, %v3119_v42  ;;  %v3091_v20 = vsel %vm4815_vm13, %v4057_v4, %v3090_v63  ;;  %v3098_v11 = vrot.slane %v2813_v12, 5  ;;  %v2919_v15 = vor.u32 %v2918_v54, %v2915_v38  ;;  %v4215_v38 = vld [vmem:[#allocation2 + $0x44] sm:$0xf0]  ;;  %v4240_v63 = vld [vmem:[%s320_s20] sm:$0xff] }
 0x198   : > { %v3121_v14 = vunpack.c.l.b16 %v3087_v46  ;;  %v3122_v16 = vunpack.c.l.b16 %v3091_v20  ;;  %v3095_v21 = vsel %vm4815_vm13, %v4058_v25, %v3094_v57  ;;  %v2358_v19 = vshrl.u32 %v2257_v53, 16 }
 0x199   : > { %2465 = vmatmul.bf16.gmra.mxu1 %v2397_v27  ;;  %v4232_v27 = vld [vmem:[%s5365_s4 + $0x200] sm:$0xff]  ;;  %v2361_v26 = vshll.u32 %v2257_v53, 16  ;;  %v3099_v31 = vsel %vm4815_vm13, %v4059_v17, %v3098_v11  ;;  %v3123_v56 = vunpack.c.l.b16 %v3095_v21  ;;  %v2540_v32 = vsel %vm4815_vm13, %v3890_v36, %v2539_v30  ;;  %v4241_v53 = vld [vmem:[%s320_s20 + $0x8] sm:$0xff] }
 0x19a   : > { %3188 = vmatpush.bf16.msra.mxu1 %v4232_v27  ;;  %v5218_v35 = vpack.c.b16 %v3122_v16, %v3121_v14  ;;  %v3124_v8 = vunpack.c.l.b16 %v3099_v31  ;;  %v2328_v51 = vsel %vm4359_vm4, %v5166_v61, %v5157_v58  ;;  %v2908_v59 = vshll.u32 %v2811_v48, 16  ;;  %v4243_v31 = vld [vmem:[%s320_s20 + $0x18] sm:$0xff] }
 0x19b   : > { %2644 = vmatmul.bf16.gmra.mxu2 %v2572_v28  ;;  %v5191_v28 = vpack.c.b16 %v3118_v5, %v3117_v22  ;;  %v2347_v0 = vshll.u32 %v2255_v34, 16  ;;  %v2393_v49 = vunpack.c.l.b16 %v2342_v44  ;;  %v2569_v60 = vunpack.c.l.b16 %v5172_v33 }
 0x19c   : > { %v5225_v6 = vpack.c.b16 %v3124_v8, %v3123_v56  ;;  %v2920_v40 = vrot.slane %v2919_v15, 4  ;;  %v2924_v45 = vrot.slane %v2922_v52, 5  ;;  %v2360_v36 = vrot.slane %v2358_v19, 4  ;;  %v4242_v15 = vld [vmem:[%s320_s20 + $0x10] sm:$0xff] }
 0x19d   : > { %v2363_v30 = vrot.slane %v2361_v26, 5  ;;  %v2392_v47 = vunpack.c.l.b16 %v2328_v51  ;;  %v2568_v1 = vunpack.c.l.b16 %v2540_v32  ;;  %v2910_v29 = vrot.slane %v2908_v59, 5 }
 0x19e   : > { %v2349_v22 = vrot.slane %v2347_v0, 5  ;;  %v2925_v33 = vsel %vm4359_vm4, %v2920_v40, %v2924_v45  ;;  %v2367_v7 = vshll.u32 %v5144_v10, 16  ;;  %v2353_v3 = vshll.u32 %v5148_v39, 16 }
 0x19f   : > { %v2398_v5 = vpack.c.b16 %v2393_v49, %v2392_v47  ;;  %v2573_v58 = vpack.c.b16 %v2569_v60, %v2568_v1  ;;  %v2364_v48 = vor.u32 %v2363_v30, %v2360_v36  ;;  %v2950_v2 = vunpack.c.l.b16 %v2925_v33 }
 0x1a0   : > { %v3971_v12 = vor.u32 %v4215_v38, %v3970_v62  ;;  %v2369_v27 = vrot.slane %v2367_v7, 5  ;;  %v2355_v4 = vrot.slane %v2353_v3, 5 }
 0x1a1   : > { %v2365_v13 = vrot.slane %v2364_v48, 4 }
 0x1a2   : > { %2779 = vmatmul.bf16.gmra.mxu3 %v3967_v41  ;;  %v2344_v41 = vshrl.u32 %v2255_v34, 16 }
 0x1a3   : > { %3025 = vmatmul.bf16.gmra.mxu0 %v2953_v43  ;;  %v2906_v43 = vrot.slane %v2905_v55, 4  ;;  %v2370_v23 = vsel %vm4359_vm4, %v2365_v13, %v2369_v27 }
 0x1a4   : > { %v2346_v50 = vrot.slane %v2344_v41, 4  ;;  %v2395_v39 = vunpack.c.l.b16 %v2370_v23 }
 0x1a5   : > { %v2911_v61 = vsel %vm4359_vm4, %v2906_v43, %v2910_v29 }
 0x1a6   : > { %v2350_v9 = vor.u32 %v2349_v22, %v2346_v50  ;;  %v2949_v42 = vunpack.c.l.b16 %v2911_v61 }
 0x1a8   : > { %v2351_v54 = vrot.slane %v2350_v9, 4  ;;  %v2954_v18 = vpack.c.b16 %v2950_v2, %v2949_v42 }
 0x1a9   : > { %2470 = vmatmul.bf16.gmra.mxu1 %v2398_v5 }
 0x1aa   : > { %v2356_v10 = vsel %vm4359_vm4, %v2351_v54, %v2355_v4 }
 0x1ab   : > { %2649 = vmatmul.bf16.gmra.mxu2 %v2573_v58  ;;  %v2394_v46 = vunpack.c.l.b16 %v2356_v10 }
 0x1ad   : > { %v2399_v25 = vpack.c.b16 %v2395_v39, %v2394_v46 }
 0x1b2   : > { %2784 = vmatmul.bf16.gmra.mxu3 %v3971_v12 }
 0x1b3   : > { %3030 = vmatmul.bf16.gmra.mxu0 %v2954_v18 }
 0x1b9   : > { %2475 = vmatmul.bf16.gmra.mxu1 %v2399_v25 }
 0x1bb   : > { %4124 = vmatmul.msk.bf16.vlgmr.msra.gmra.mxu2 %vm387_vm1, %v4240_v63 }
 0x1bd   : > { %v1912_v44 = vpop.f32.mrf.mxu2 }
 0x1bf   : > { %v2215_v56 = vpop.f32.mrf.mxu0 }
 0x1c5   : > { %v1914_v55 = vpop.f32.mrf.mxu2  ;;  %v2081_v26 = vpop.f32.mrf.mxu3 }
 0x1c6   : > { %v1811_v57 = vpop.f32.mrf.mxu1 }
 0x1c7   : > { %v1913_v17 = vadd.f32 %v1912_v44, %v1811_v57  ;;  %v2217_v0 = vpop.f32.mrf.mxu0 }
 0x1c9   : > { %3189 = vmatmul.bf16.vlgmr.msra.gmra.mxu1 %v5191_v28  ;;  %v2101_v4 = vadd.f32 %v2081_v26, %v1913_v17  ;;  %v5304_v26 = vld [vmem:[%s5366_s5] ss:$0 sm:$0xff] }
 0x1cb   : > { %4125 = vmatmul.msk.bf16.gmra.mxu2 %vm387_vm1, %v4241_v53  ;;  %v2235_v46 = vadd.f32 %v2215_v56, %v2101_v4 }
 0x1cd   : > { %v2083_v51 = vpop.f32.mrf.mxu3 }
 0x1ce   : > { %v1917_v37 = vpop.f32.mrf.mxu2  ;;  %v1813_v52 = vpop.f32.mrf.mxu1 }
 0x1cf   : > { %v1915_v20 = vadd.f32 %v1914_v55, %v1813_v52 }
 0x1d0   : > { %v2220_v45 = vpop.f32.mrf.mxu0 }
 0x1d1   : > { %v2102_v25 = vadd.f32 %v2083_v51, %v1915_v20 }
 0x1d5   : > { %v2086_v60 = vpop.f32.mrf.mxu3 }
 0x1d6   : > { %v1919_v11 = vpop.f32.mrf.mxu2  ;;  %v1816_v34 = vpop.f32.mrf.mxu1 }
 0x1d7   : > { %v5244_v14 = vadd.f32 %v1917_v37, %v1816_v34  ;;  %v2236_v37 = vadd.f32 %v2217_v0, %v2102_v25  ;;  %v5299_v34 = vld [vmem:[%s5368_s7] ss:$0 sm:$0xff] }
 0x1d8   : > { %v2222_v1 = vpop.f32.mrf.mxu0 }
 0x1d9   : > { %3194 = vmatmul.bf16.gmra.mxu1 %v5201_v24  ;;  %v2103_v17 = vadd.f32 %v2086_v60, %v5244_v14 }
 0x1db   : > { %4126 = vmatmul.msk.bf16.gmra.mxu2 %vm387_vm1, %v4242_v15  ;;  %v2237_v56 = vadd.f32 %v2220_v45, %v2103_v17 }
 0x1de   : > { %v1922_v16 = vpop.f32.mrf.mxu2  ;;  %v1818_v21 = vpop.f32.mrf.mxu1 }
 0x1df   : > { %v5248_v19 = vadd.f32 %v1919_v11, %v1818_v21 }
 0x1e0   : > { %v5263_v58 = vpop.f32.mrf.mxu0 }
 0x1e6   : > { %v1924_v28 = vpop.f32.mrf.mxu2  ;;  %v1821_v32 = vpop.f32.mrf.mxu1 }
 0x1e7   : > { %v5250_v8 = vadd.f32 %v1922_v16, %v1821_v32 }
 0x1e8   : > { %v5269_v9 = vpop.f32.mrf.mxu0 }
 0x1e9   : > { %3199 = vmatmul.bf16.gmra.mxu1 %v5218_v35  ;;  %v2088_v35 = vpop.f32.mrf.mxu3 }
 0x1eb   : > { %4127 = vmatmul.msk.bf16.gmra.mxu2 %vm387_vm1, %v4243_v31 }
 0x1ee   : > { %v1927_v59 = vpop.f32.mrf.mxu2  ;;  %v1823_v24 = vpop.f32.mrf.mxu1 }
 0x1ef   : > { %v5254_v41 = vadd.f32 %v1924_v28, %v1823_v24 }
 0x1f0   : > { %v5275_v42 = vpop.f32.mrf.mxu0 }
 0x1f1   : > { %v5261_v22 = vpop.f32.mrf.mxu3 }
 0x1f6   : > { %v1929_v49 = vpop.f32.mrf.mxu2  ;;  %v1826_v43 = vpop.f32.mrf.mxu1 }
 0x1f7   : > { %v5256_v40 = vadd.f32 %v1927_v59, %v1826_v43 }
 0x1f8   : > { %v5283_v12 = vpop.f32.mrf.mxu0 }
 0x1f9   : > { %3204 = vmatmul.bf16.gmra.mxu1 %v5225_v6  ;;  %v5265_v33 = vpop.f32.mrf.mxu3 }
 0x1fe   : > { %v2635_v36 = vpop.f32.mrf.mxu2  ;;  %v1828_v30 = vpop.f32.mrf.mxu1 }
 0x1ff   : > { %v5259_v47 = vadd.f32 %v1929_v49, %v1828_v30  ;;  %v2104_v49 = vadd.f32 %v2088_v35, %v5248_v19 }
 0x200   : > { %v3016_v10 = vpop.f32.mrf.mxu0 }
 0x201   : > { %v5273_v62 = vpop.f32.mrf.mxu3 }
 0x206   : > { %v2637_v29 = vpop.f32.mrf.mxu2  ;;  %v2461_v50 = vpop.f32.mrf.mxu1 }
 0x207   : > { %v2481_v63 = vadd.f32 %v2461_v50, %v2235_v46  ;;  %v2238_v50 = vadd.f32 %v2222_v1, %v2104_v49 }
 0x208   : > { %v3018_v52 = vpop.f32.mrf.mxu0 }
 0x209   : > { %v5281_v13 = vpop.f32.mrf.mxu3  ;;  %v2655_v53 = vadd.f32 %v2635_v36, %v2481_v63 }
 0x20e   : > { %v2640_v5 = vpop.f32.mrf.mxu2  ;;  %v2463_v61 = vpop.f32.mrf.mxu1 }
 0x20f   : > { %v2482_v15 = vadd.f32 %v2463_v61, %v2236_v37 }
 0x210   : > { %v3021_v0 = vpop.f32.mrf.mxu0 }
 0x211   : > { %v2770_v18 = vpop.f32.mrf.mxu3  ;;  %v2656_v21 = vadd.f32 %v2637_v29, %v2482_v15 }
 0x212   : > { %v2790_v11 = vadd.f32 %v2770_v18, %v2655_v53 }
 0x214   : > { %v3036_v20 = vadd.f32 %v3016_v10, %v2790_v11  ;;  %v2105_v10 = vadd.f32 %v5261_v22, %v5250_v8 }
 0x216   : > { %v5267_v48 = vpop.f32.mrf.mxu2  ;;  %v2466_v6 = vpop.f32.mrf.mxu1  ;;  %v2239_v53 = vadd.f32 %v5263_v58, %v2105_v10 }
 0x217   : > { %v2483_v59 = vadd.f32 %v2466_v6, %v2237_v56 }
 0x218   : > { %v3023_v63 = vpop.f32.mrf.mxu0 }
 0x219   : > { %v2772_v44 = vpop.f32.mrf.mxu3  ;;  %v2657_v45 = vadd.f32 %v2640_v5, %v2483_v59 }
 0x21a   : > { %v2791_v14 = vadd.f32 %v2772_v44, %v2656_v21 }
 0x21c   : > { %v3037_v30 = vadd.f32 %v3018_v52, %v2791_v14 }
 0x21e   : > { %v5271_v7 = vpop.f32.mrf.mxu2  ;;  %v2468_v38 = vpop.f32.mrf.mxu1 }
 0x21f   : > { %v2484_v4 = vadd.f32 %v2468_v38, %v2238_v50 }
 0x220   : > { %v3026_v58 = vpop.f32.mrf.mxu0 }
 0x221   : > { %v2775_v28 = vpop.f32.mrf.mxu3  ;;  %v2658_v5 = vadd.f32 %v5267_v48, %v2484_v4  ;;  %v2106_v48 = vadd.f32 %v5265_v33, %v5254_v41  ;;  %v2107_v33 = vadd.f32 %v5273_v62, %v5256_v40 }
 0x222   : > { %v2792_v18 = vadd.f32 %v2775_v28, %v2657_v45 }
 0x223   : > { %v2240_v28 = vadd.f32 %v5269_v9, %v2106_v48  ;;  %v2241_v49 = vadd.f32 %v5275_v42, %v2107_v33 }
 0x224   : > { %v3038_v44 = vadd.f32 %v3021_v0, %v2792_v18 }
 0x226   : > { %v5277_v2 = vpop.f32.mrf.mxu2  ;;  %v5279_v3 = vpop.f32.mrf.mxu1 }
 0x227   : > { %v2485_v11 = vadd.f32 %v5279_v3, %v2239_v53 }
 0x229   : > { %v2777_v6 = vpop.f32.mrf.mxu3  ;;  %v2659_v17 = vadd.f32 %v5271_v7, %v2485_v11 }
 0x22a   : > { %v2793_v52 = vadd.f32 %v2777_v6, %v2658_v5 }
 0x22c   : > { %v3039_v21 = vadd.f32 %v3023_v63, %v2793_v52 }
 0x22e   : > { %v5285_v54 = vpop.f32.mrf.mxu2  ;;  %v5287_v27 = vpop.f32.mrf.mxu1 }
 0x231   : > { %v2780_v22 = vpop.f32.mrf.mxu3 }
 0x232   : > { %v2794_v3 = vadd.f32 %v2780_v22, %v2659_v17 }
 0x234   : > { %v3040_v9 = vadd.f32 %v3026_v58, %v2794_v3 }
 0x236   : > { %v5289_v23 = vpop.f32.mrf.mxu2  ;;  %v5291_v39 = vpop.f32.mrf.mxu1 }
 0x239   : > { %v2782_v14 = vpop.f32.mrf.mxu3 }
 0x23e   : > { %v3275_v55 = vpop.f32.mrf.mxu2  ;;  %v5293_v57 = vpop.f32.mrf.mxu1 }
 0x23f   : > { %v3276_v32 = vadd.f32 %v5299_v34, %v3275_v55 }
 0x246   : > { %v3277_v16 = vpop.f32.mrf.mxu2  ;;  %v3190_v31 = vpop.f32.mrf.mxu1 }
 0x247   : > { %v3210_v51 = vadd.f32 %v3190_v31, %v3036_v20  ;;  %v3278_v19 = vadd.f32 %v5299_v34, %v3277_v16 }
 0x249   : > { %v3299_v24 = vadd.f32 %v5304_v26, %v3210_v51 }
 0x24b   : > { %v3307_v60 = vadd.f32 %v3299_v24, %v3276_v32  ;;  %v2486_v32 = vadd.f32 %v5287_v27, %v2240_v28 }
 0x24d   : > { %v3315_v36 = vmax.f32 %v3307_v60, 0.0  ;;  %v2660_v59 = vadd.f32 %v5277_v2, %v2486_v32  ;;  %v2108_v2 = vadd.f32 %v5281_v13, %v5259_v47 }
 0x24e   : > { %v3280_v43 = vpop.f32.mrf.mxu2  ;;  %v3192_v29 = vpop.f32.mrf.mxu1 }
 0x24f   : > { %3323 = vst [vmem:[%s5313_s30] sm:$0xff] %v3315_v36  ;;  %v3211_v61 = vadd.f32 %v3192_v29, %v3037_v30  ;;  %v3281_v38 = vadd.f32 %v5299_v34, %v3280_v43  ;;  %v3028_v43 = vpop.f32.mrf.mxu0  ;;  %v2795_v45 = vadd.f32 %v2782_v14, %v2660_v59  ;;  %v2487_v36 = vadd.f32 %v5291_v39, %v2241_v49 }
 0x250   : > { %v2242_v18 = vadd.f32 %v5283_v12, %v2108_v2 }
 0x251   : > { %v3300_v35 = vadd.f32 %v5304_v26, %v3211_v61  ;;  %v2661_v29 = vadd.f32 %v5285_v54, %v2487_v36  ;;  %v3041_v42 = vadd.f32 %v3028_v43, %v2795_v45  ;;  %v2785_v61 = vpop.f32.mrf.mxu3 }
 0x252   : > { %v2488_v39 = vadd.f32 %v5293_v57, %v2242_v18 }
 0x253   : > { %v3308_v46 = vadd.f32 %v3300_v35, %v3278_v19  ;;  %v2796_v19 = vadd.f32 %v2785_v61, %v2661_v29 }
 0x254   : > { %v2662_v54 = vadd.f32 %v5289_v23, %v2488_v39 }
 0x255   : > { %v3316_v25 = vmax.f32 %v3308_v46, 0.0 }
 0x256   : > { %v3195_v1 = vpop.f32.mrf.mxu1  ;;  %v3282_v55 = vpop.f32.mrf.mxu2 }
 0x257   : > { %3324 = vst [vmem:[%s5313_s30 + $0x8] sm:$0xff] %v3316_v25  ;;  %v3212_v37 = vadd.f32 %v3195_v1, %v3038_v44  ;;  %v3283_v51 = vadd.f32 %v5299_v34, %v3282_v55  ;;  %v3031_v47 = vpop.f32.mrf.mxu0 }
 0x258   : > { %v3042_v5 = vadd.f32 %v3031_v47, %v2796_v19 }
 0x259   : > { %v3301_v8 = vadd.f32 %v5304_v26, %v3212_v37  ;;  %v2787_v1 = vpop.f32.mrf.mxu3 }
 0x25a   : > { %v2797_v57 = vadd.f32 %v2787_v1, %v2662_v54 }
 0x25b   : > { %v3309_v15 = vadd.f32 %v3301_v8, %v3281_v38 }
 0x25d   : > { %v3317_v16 = vmax.f32 %v3309_v15, 0.0 }
 0x25e   : > { %v3197_v20 = vpop.f32.mrf.mxu1  ;;  %v3285_v56 = vpop.f32.mrf.mxu2 }
 0x25f   : > { %3325 = vst [vmem:[%s5313_s30 + $0x10] sm:$0xff] %v3317_v16  ;;  %v3213_v31 = vadd.f32 %v3197_v20, %v3039_v21  ;;  %v3286_v27 = vadd.f32 %v5299_v34, %v3285_v56  ;;  %v3033_v38 = vpop.f32.mrf.mxu0 }
 0x260   : > { %v3043_v52 = vadd.f32 %v3033_v38, %v2797_v57 }
 0x261   : > { %v3302_v41 = vadd.f32 %v5304_v26, %v3213_v31 }
 0x263   : > { %v3310_v7 = vadd.f32 %v3302_v41, %v3283_v51 }
 0x265   : > { %v3318_v24 = vmax.f32 %v3310_v7, 0.0 }
 0x266   : > { %v3200_v0 = vpop.f32.mrf.mxu1  ;;  %v3287_v62 = vpop.f32.mrf.mxu2 }
 0x267   : > { %3326 = vst [vmem:[%s5313_s30 + $0x18] sm:$0xff] %v3318_v24  ;;  %v3214_v60 = vadd.f32 %v3200_v0, %v3040_v9  ;;  %v3288_v35 = vadd.f32 %v5299_v34, %v3287_v62 }
 0x269   : > { %v3303_v40 = vadd.f32 %v5304_v26, %v3214_v60 }
 0x26b   : > { %v3311_v30 = vadd.f32 %v3303_v40, %v3286_v27 }
 0x26d   : > { %v3319_v50 = vmax.f32 %v3311_v30, 0.0 }
 0x26e   : > { %v3202_v6 = vpop.f32.mrf.mxu1  ;;  %v3290_v46 = vpop.f32.mrf.mxu2 }
 0x26f   : > { %3327 = vst [vmem:[%s5313_s30 + $0x20] sm:$0xff] %v3319_v50  ;;  %v3215_v4 = vadd.f32 %v3202_v6, %v3041_v42  ;;  %v3291_v12 = vadd.f32 %v5299_v34, %v3290_v46 }
 0x271   : > { %v3304_v10 = vadd.f32 %v5304_v26, %v3215_v4 }
 0x273   : > { %v3312_v13 = vadd.f32 %v3304_v10, %v3288_v35 }
 0x275   : > { %v3320_v63 = vmax.f32 %v3312_v13, 0.0 }
 0x276   : > { %v3205_v25 = vpop.f32.mrf.mxu1  ;;  %v3292_v11 = vpop.f32.mrf.mxu2 }
 0x277   : > { %3328 = vst [vmem:[%s5313_s30 + $0x28] sm:$0xff] %v3320_v63  ;;  %v3216_v44 = vadd.f32 %v3205_v25, %v3042_v5  ;;  %v3293_v22 = vadd.f32 %v5299_v34, %v3292_v11 }
 0x279   : > { %v3305_v55 = vadd.f32 %v5304_v26, %v3216_v44 }
 0x27b   : > { %v3313_v53 = vadd.f32 %v3305_v55, %v3291_v12 }
 0x27d   : > { %v3321_v37 = vmax.f32 %v3313_v53, 0.0 }
 0x27e   : > { %v3207_v8 = vpop.f32.mrf.mxu1 }
 0x27f   : > { %3329 = vst [vmem:[%s5313_s30 + $0x30] sm:$0xff] %v3321_v37  ;;  %v3217_v23 = vadd.f32 %v3207_v8, %v3043_v52 }
 0x281   : > { %v3306_v48 = vadd.f32 %v5304_v26, %v3217_v23 }
 0x283   : > { %v3314_v15 = vadd.f32 %v3306_v48, %v3293_v22 }
 0x285   : > { %v3322_v17 = vmax.f32 %v3314_v15, 0.0 }
 0x287   : > { %3330 = vst [vmem:[%s5313_s30 + $0x38] sm:$0xff] %v3322_v17 }
 0x288 PF: > { %s18_s27 = sadd.s32 1, %s4266_s27  }
 0x289   : > { %p15_p4 = scmp.ge.s32.totalorder %s18_s27, 4  }
 0x28b   :  { %17 = sbr.rel (!%p15_p4) target bundleno = 1 (0x1), region = 108 }

</bundles_post_ra>
